<compile_context>
chip_gen: v6e
topology: v6e:2x2x1
jax: 0.10.0
libtpu: 0.0.40
codegen_flags: <defaults>
</compile_context>

<pallas_src>
import functools

import numpy as np
import jax
import jax.numpy as jnp
from jax import lax
from jax.experimental import pallas as pl
from jax.experimental.pallas import tpu as pltpu


# ----------------------------------------------------------------------------- kernel

def _mhe_kernel(x_ref, y_ref, m_ref, invn_ref, w_ref, fcw_ref, fcb_ref,
                o_ref, q_scr, k_scr, *, n_heads, tb):
    """Fused MultiHeadExpectation forward for a TB-sized batch tile."""
    wt = w_ref[...]                                   # (U, U) bf16 = W^T (in, out)
    U = wt.shape[1]
    c = U // n_heads

    # Shared 1x1-conv projection. x_ref[b] is the native (U, L) tile; dot_general
    # contracts the U axis directly (no HBM / in-kernel transpose), result is the
    # channels-last (L, U) projection used for head slicing.
    for b in range(tb):
        q_scr[b] = lax.dot_general(
            x_ref[b], wt, (((0,), (0,)), ((), ())),
            preferred_element_type=jnp.float32).astype(jnp.bfloat16)
        k_scr[b] = lax.dot_general(
            y_ref[b], wt, (((0,), (0,)), ((), ())),
            preferred_element_type=jnp.float32).astype(jnp.bfloat16)

    q = q_scr[...]                                    # (TB, Lx, U) bf16
    k = k_scr[...]                                    # (TB, Ly, U) bf16
    lx = q.shape[1]
    ly = k.shape[1]

    # Weighted per-head accumulation into one f32 buffer. fcw already carries the
    # 1/sqrt(c) score scale; relu commutes with the positive post-scale, so
    # acc = sum_h fcw[h] * relu(q_h k_h^T) is equivalent to the reference ordering.
    acc = jnp.zeros((tb, lx, ly), jnp.float32)
    for h in range(n_heads):
        qh = q[:, :, h * c:(h + 1) * c]               # (TB, Lx, c) bf16, static lane slice
        kh = k[:, :, h * c:(h + 1) * c]               # (TB, Ly, c)
        a = jnp.einsum("bxc,byc->bxy", qh, kh,
                       preferred_element_type=jnp.float32)   # batched MXU matmul
        acc = acc + fcw_ref[h] * jnp.maximum(a, 0.0)  # SMEM scalar broadcast

    # Apply the mask once and reduce once for the whole batch tile.
    mf = m_ref[...].astype(jnp.float32)               # (TB, Lx, Ly), int8 {0,1} -> f32
    t = jnp.sum(acc * mf, axis=2)                     # (TB, Lx)
    s = jnp.sum(t, axis=1)                            # (TB,)

    out = s * invn_ref[0, 0] + fcb_ref[0]             # exact 1/n from wrapper, fc bias
    o_ref[...] = out.reshape(1, 1, tb).astype(o_ref.dtype)


# ----------------------------------------------------------------------------- wrapper

def _pick_batch_tile(batch, target):
    """Largest divisor of `batch` that is <= target and keeps >= 2 grid steps."""
    tb = max(1, min(target, batch // 2 if batch >= 2 else 1))
    while batch % tb:
        tb -= 1
    return tb


def multi_head_expectation(w, fc_w, fc_b, x, y, xy_mask, n_heads=8, batch_tile=8):
    """x: (B, U, Lx), y: (B, U, Ly), xy_mask: (B, Lx, Ly) bool  ->  (B, 1) f32."""
    B, U, Lx = x.shape
    Ly = y.shape[2]
    assert U % n_heads == 0
    c = U // n_heads
    scale = 1.0 / (c ** 0.5)

    tb = _pick_batch_tile(B, batch_tile)
    nb = B // tb

    # Native (B, U, L) layout -- no wrapper transpose; bf16 MXU operands.
    x_bf = x.astype(jnp.bfloat16)
    y_bf = y.astype(jnp.bfloat16)
    w_t = jnp.asarray(w, jnp.float32).T.astype(jnp.bfloat16)      # (U_in, U_out)
    mask_i8 = xy_mask.astype(jnp.int8)                            # (B, Lx, Ly)

    # Exact per-batch 1/n_elements computed once here (tiny), shipped as a
    # lane-dense (1, 1, TB) block per grid step.
    n = jnp.sum(xy_mask, axis=(1, 2)).astype(jnp.float32)
    n = jnp.where(n == 0, 1.0, n)
    inv_n = (1.0 / n).reshape(nb, 1, tb)

    # fc weights/bias as SMEM scalars; 1/sqrt(c) score scale folded into the weights.
    fcw = jnp.asarray(fc_w, jnp.float32).reshape(n_heads) * scale
    fcb = jnp.asarray(fc_b, jnp.float32).reshape(1)

    kernel = functools.partial(_mhe_kernel, n_heads=n_heads, tb=tb)
    out = pl.pallas_call(
        kernel,
        out_shape=jax.ShapeDtypeStruct((nb, 1, tb), jnp.float32),
        grid=(nb,),
        in_specs=[
            pl.BlockSpec((tb, U, Lx), lambda i: (i, 0, 0)),
            pl.BlockSpec((tb, U, Ly), lambda i: (i, 0, 0)),
            pl.BlockSpec((tb, Lx, Ly), lambda i: (i, 0, 0)),
            pl.BlockSpec((1, 1, tb), lambda i: (i, 0, 0)),
            pl.BlockSpec((U, U), lambda i: (0, 0)),
            pl.BlockSpec(memory_space=pltpu.MemorySpace.SMEM),
            pl.BlockSpec(memory_space=pltpu.MemorySpace.SMEM),
        ],
        out_specs=pl.BlockSpec((1, 1, tb), lambda i: (i, 0, 0)),
        scratch_shapes=[
            pltpu.VMEM((tb, Lx, U), jnp.bfloat16),
            pltpu.VMEM((tb, Ly, U), jnp.bfloat16),
        ],
        compiler_params=pltpu.CompilerParams(
            dimension_semantics=("parallel",)),       # batch-tile axis -> both TCs on v7x
    )(x_bf, y_bf, mask_i8, inv_n, w_t, fcw, fcb)
    return out.reshape(B, 1)


# ----------------------------------------------------------------------------- pure-JAX reference

def reference_forward(w, fc_w, fc_b, x, y, xy_mask, n_heads=8):
    B, U, Lx = x.shape
    Ly = y.shape[2]
    c = U // n_heads
    scale = 1.0 / (c ** 0.5)
    xf = x.astype(jnp.float32)
    yf = y.astype(jnp.float32)
    _x = jnp.einsum("oi,bil->bol", w, xf)                         # W @ x  (1x1 conv)
    _y = jnp.einsum("oi,bil->bol", w, yf)
    n_elements = jnp.sum(xy_mask, axis=(1, 2)).astype(jnp.float32)
    n_elements = jnp.where(n_elements == 0, jnp.ones_like(n_elements), n_elements)
    xh = _x.reshape(B, n_heads, c, Lx)
    yh = _y.reshape(B, n_heads, c, Ly)
    a = jnp.einsum("bhcx,bhcy->bhxy", xh, yh)
    a = jnp.maximum(a, 0.0) * scale
    a = jnp.where(xy_mask[:, None], a, 0.0)
    similarity = jnp.sum(a, axis=(2, 3))                          # (B, H)
    expectation = similarity / n_elements[:, None]
    return expectation @ jnp.asarray(fc_w, jnp.float32).T + fc_b  # (B, 1)


# ----------------------------------------------------------------------------- main

if __name__ == "__main__":
    B, U, H, Lx, Ly = 16, 32, 8, 8, 12
    key = jax.random.PRNGKey(0)
    kw, kfw, kfb, kx, ky, km = jax.random.split(key, 6)

    w = 0.2 * jax.random.normal(kw, (U, U), dtype=jnp.float32)        # conv weight (out, in)
    fc_w = 0.2 * jax.random.normal(kfw, (1, H), dtype=jnp.float32)    # Linear(H, 1) weight
    fc_b = 0.05 * jax.random.normal(kfb, (1,), dtype=jnp.float32)     # Linear(H, 1) bias

    x = jax.random.normal(kx, (B, U, Lx), dtype=jnp.float32)          # (batch, n_units, n_x)
    y = jax.random.normal(ky, (B, U, Ly), dtype=jnp.float32)          # (batch, n_units, n_y)
    xy_mask = jax.random.bernoulli(km, 0.7, (B, Lx, Ly))              # (batch, n_x, n_y) bool

    out = multi_head_expectation(w, fc_w, fc_b, x, y, xy_mask, n_heads=H)
    out = jax.block_until_ready(out)

    ref = reference_forward(w, fc_w, fc_b, x, y, xy_mask, n_heads=H)
    assert out.shape == (B, 1)
    np.testing.assert_allclose(np.asarray(out), np.asarray(ref), rtol=2e-2, atol=2e-2)

    print("KERNEL_OK")
</pallas_src>

<mosaic_0001>
module attributes {stable_mosaic.version = 11 : i64} {
  func.func @_mhe_kernel(%arg0: i32, %arg1: memref<8x32x8xbf16, #tpu.memory_space<vmem>>, %arg2: memref<8x32x12xbf16, #tpu.memory_space<vmem>>, %arg3: memref<8x8x12xi8, #tpu.memory_space<vmem>>, %arg4: memref<1x1x8xf32, #tpu.memory_space<vmem>>, %arg5: memref<32x32xbf16, #tpu.memory_space<vmem>>, %arg6: memref<8xf32, #tpu.memory_space<smem>>, %arg7: memref<1xf32, #tpu.memory_space<smem>>, %arg8: memref<1x1x8xf32, #tpu.memory_space<vmem>>, %arg9: memref<8x8x32xbf16, #tpu.memory_space<vmem>>, %arg10: memref<8x12x32xbf16, #tpu.memory_space<vmem>>) attributes {dimension_semantics = [#tpu.dimension_semantics<parallel>], iteration_bounds = array<i64: 2>, scalar_prefetch = 0 : i64, scratch_operands = 2 : i64, tpu.core_type = #tpu.core_type<tc>, window_params = [{transform_indices = @transform_0, window_bounds = array<i64: 8, 32, 8>}, {transform_indices = @transform_1, window_bounds = array<i64: 8, 32, 12>}, {transform_indices = @transform_2, window_bounds = array<i64: 8, 8, 12>}, {transform_indices = @transform_3, window_bounds = array<i64: 1, 1, 8>}, {pipeline_mode = #tpu.pipeline_mode<synchronous>, transform_indices = @transform_4, window_bounds = array<i64: 32, 32>}, {transform_indices = @transform_5, window_bounds = array<i64: 8>}, {transform_indices = @transform_6, window_bounds = array<i64: 1>}, {transform_indices = @transform_7, window_bounds = array<i64: 1, 1, 8>}]} {
    %c0 = arith.constant 0 : index
    %c0_0 = arith.constant 0 : index
    %0 = vector.load %arg5[%c0, %c0_0] : memref<32x32xbf16, #tpu.memory_space<vmem>>, vector<32x32xbf16>
    %c0_1 = arith.constant 0 : index
    %c0_2 = arith.constant 0 : index
    %c0_3 = arith.constant 0 : index
    %1 = vector.load %arg1[%c0_1, %c0_2, %c0_3] : memref<8x32x8xbf16, #tpu.memory_space<vmem>>, vector<1x32x8xbf16>
    %2 = vector.shape_cast %1 : vector<1x32x8xbf16> to vector<32x8xbf16>
    %cst = arith.constant dense<0.000000e+00> : vector<8x32xf32>
    %3 = tpu.matmul %2, %0, %cst {dimension_numbers = #tpu.dot_dimension_numbers<[0], [0], [1], [1], [0, 1, 1, 1], [], []>} : vector<32x8xbf16>, vector<32x32xbf16>, vector<8x32xf32> -> vector<8x32xf32>
    %4 = arith.truncf %3 : vector<8x32xf32> to vector<8x32xbf16>
    %c0_4 = arith.constant 0 : index
    %c0_5 = arith.constant 0 : index
    %c0_6 = arith.constant 0 : index
    %5 = vector.load %arg9[%c0_4, %c0_5, %c0_6] : memref<8x8x32xbf16, #tpu.memory_space<vmem>>, vector<1x8x32xbf16>
    %6 = vector.shape_cast %5 : vector<1x8x32xbf16> to vector<8x32xbf16>
    %7 = vector.shape_cast %4 : vector<8x32xbf16> to vector<1x8x32xbf16>
    tpu.vector_store %arg9[%c0_4, %c0_5, %c0_6], %7 {strides = array<i32>} : memref<8x8x32xbf16, #tpu.memory_space<vmem>>, vector<1x8x32xbf16>,
    %c0_7 = arith.constant 0 : index
    %c0_8 = arith.constant 0 : index
    %c0_9 = arith.constant 0 : index
    %8 = vector.load %arg2[%c0_7, %c0_8, %c0_9] : memref<8x32x12xbf16, #tpu.memory_space<vmem>>, vector<1x32x12xbf16>
    %9 = vector.shape_cast %8 : vector<1x32x12xbf16> to vector<32x12xbf16>
    %cst_10 = arith.constant dense<0.000000e+00> : vector<12x32xf32>
    %10 = tpu.matmul %9, %0, %cst_10 {dimension_numbers = #tpu.dot_dimension_numbers<[0], [0], [1], [1], [0, 1, 1, 1], [], []>} : vector<32x12xbf16>, vector<32x32xbf16>, vector<12x32xf32> -> vector<12x32xf32>
    %11 = arith.truncf %10 : vector<12x32xf32> to vector<12x32xbf16>
    %c0_11 = arith.constant 0 : index
    %c0_12 = arith.constant 0 : index
    %c0_13 = arith.constant 0 : index
    %12 = vector.load %arg10[%c0_11, %c0_12, %c0_13] : memref<8x12x32xbf16, #tpu.memory_space<vmem>>, vector<1x12x32xbf16>
    %13 = vector.shape_cast %12 : vector<1x12x32xbf16> to vector<12x32xbf16>
    %14 = vector.shape_cast %11 : vector<12x32xbf16> to vector<1x12x32xbf16>
    tpu.vector_store %arg10[%c0_11, %c0_12, %c0_13], %14 {strides = array<i32>} : memref<8x12x32xbf16, #tpu.memory_space<vmem>>, vector<1x12x32xbf16>,
    %c1 = arith.constant 1 : index
    %c0_14 = arith.constant 0 : index
    %c0_15 = arith.constant 0 : index
    %15 = vector.load %arg1[%c1, %c0_14, %c0_15] : memref<8x32x8xbf16, #tpu.memory_space<vmem>>, vector<1x32x8xbf16>
    %16 = vector.shape_cast %15 : vector<1x32x8xbf16> to vector<32x8xbf16>
    %cst_16 = arith.constant dense<0.000000e+00> : vector<8x32xf32>
    %17 = tpu.matmul %16, %0, %cst_16 {dimension_numbers = #tpu.dot_dimension_numbers<[0], [0], [1], [1], [0, 1, 1, 1], [], []>} : vector<32x8xbf16>, vector<32x32xbf16>, vector<8x32xf32> -> vector<8x32xf32>
    %18 = arith.truncf %17 : vector<8x32xf32> to vector<8x32xbf16>
    %c1_17 = arith.constant 1 : index
    %c0_18 = arith.constant 0 : index
    %c0_19 = arith.constant 0 : index
    %19 = vector.load %arg9[%c1_17, %c0_18, %c0_19] : memref<8x8x32xbf16, #tpu.memory_space<vmem>>, vector<1x8x32xbf16>
    %20 = vector.shape_cast %19 : vector<1x8x32xbf16> to vector<8x32xbf16>
    %21 = vector.shape_cast %18 : vector<8x32xbf16> to vector<1x8x32xbf16>
    tpu.vector_store %arg9[%c1_17, %c0_18, %c0_19], %21 {strides = array<i32>} : memref<8x8x32xbf16, #tpu.memory_space<vmem>>, vector<1x8x32xbf16>,
    %c1_20 = arith.constant 1 : index
    %c0_21 = arith.constant 0 : index
    %c0_22 = arith.constant 0 : index
    %22 = vector.load %arg2[%c1_20, %c0_21, %c0_22] : memref<8x32x12xbf16, #tpu.memory_space<vmem>>, vector<1x32x12xbf16>
    %23 = vector.shape_cast %22 : vector<1x32x12xbf16> to vector<32x12xbf16>
    %cst_23 = arith.constant dense<0.000000e+00> : vector<12x32xf32>
    %24 = tpu.matmul %23, %0, %cst_23 {dimension_numbers = #tpu.dot_dimension_numbers<[0], [0], [1], [1], [0, 1, 1, 1], [], []>} : vector<32x12xbf16>, vector<32x32xbf16>, vector<12x32xf32> -> vector<12x32xf32>
    %25 = arith.truncf %24 : vector<12x32xf32> to vector<12x32xbf16>
    %c1_24 = arith.constant 1 : index
    %c0_25 = arith.constant 0 : index
    %c0_26 = arith.constant 0 : index
    %26 = vector.load %arg10[%c1_24, %c0_25, %c0_26] : memref<8x12x32xbf16, #tpu.memory_space<vmem>>, vector<1x12x32xbf16>
    %27 = vector.shape_cast %26 : vector<1x12x32xbf16> to vector<12x32xbf16>
    %28 = vector.shape_cast %25 : vector<12x32xbf16> to vector<1x12x32xbf16>
    tpu.vector_store %arg10[%c1_24, %c0_25, %c0_26], %28 {strides = array<i32>} : memref<8x12x32xbf16, #tpu.memory_space<vmem>>, vector<1x12x32xbf16>,
    %c2 = arith.constant 2 : index
    %c0_27 = arith.constant 0 : index
    %c0_28 = arith.constant 0 : index
    %29 = vector.load %arg1[%c2, %c0_27, %c0_28] : memref<8x32x8xbf16, #tpu.memory_space<vmem>>, vector<1x32x8xbf16>
    %30 = vector.shape_cast %29 : vector<1x32x8xbf16> to vector<32x8xbf16>
    %cst_29 = arith.constant dense<0.000000e+00> : vector<8x32xf32>
    %31 = tpu.matmul %30, %0, %cst_29 {dimension_numbers = #tpu.dot_dimension_numbers<[0], [0], [1], [1], [0, 1, 1, 1], [], []>} : vector<32x8xbf16>, vector<32x32xbf16>, vector<8x32xf32> -> vector<8x32xf32>
    %32 = arith.truncf %31 : vector<8x32xf32> to vector<8x32xbf16>
    %c2_30 = arith.constant 2 : index
    %c0_31 = arith.constant 0 : index
    %c0_32 = arith.constant 0 : index
    %33 = vector.load %arg9[%c2_30, %c0_31, %c0_32] : memref<8x8x32xbf16, #tpu.memory_space<vmem>>, vector<1x8x32xbf16>
    %34 = vector.shape_cast %33 : vector<1x8x32xbf16> to vector<8x32xbf16>
    %35 = vector.shape_cast %32 : vector<8x32xbf16> to vector<1x8x32xbf16>
    tpu.vector_store %arg9[%c2_30, %c0_31, %c0_32], %35 {strides = array<i32>} : memref<8x8x32xbf16, #tpu.memory_space<vmem>>, vector<1x8x32xbf16>,
    %c2_33 = arith.constant 2 : index
    %c0_34 = arith.constant 0 : index
    %c0_35 = arith.constant 0 : index
    %36 = vector.load %arg2[%c2_33, %c0_34, %c0_35] : memref<8x32x12xbf16, #tpu.memory_space<vmem>>, vector<1x32x12xbf16>
    %37 = vector.shape_cast %36 : vector<1x32x12xbf16> to vector<32x12xbf16>
    %cst_36 = arith.constant dense<0.000000e+00> : vector<12x32xf32>
    %38 = tpu.matmul %37, %0, %cst_36 {dimension_numbers = #tpu.dot_dimension_numbers<[0], [0], [1], [1], [0, 1, 1, 1], [], []>} : vector<32x12xbf16>, vector<32x32xbf16>, vector<12x32xf32> -> vector<12x32xf32>
    %39 = arith.truncf %38 : vector<12x32xf32> to vector<12x32xbf16>
    %c2_37 = arith.constant 2 : index
    %c0_38 = arith.constant 0 : index
    %c0_39 = arith.constant 0 : index
    %40 = vector.load %arg10[%c2_37, %c0_38, %c0_39] : memref<8x12x32xbf16, #tpu.memory_space<vmem>>, vector<1x12x32xbf16>
    %41 = vector.shape_cast %40 : vector<1x12x32xbf16> to vector<12x32xbf16>
    %42 = vector.shape_cast %39 : vector<12x32xbf16> to vector<1x12x32xbf16>
    tpu.vector_store %arg10[%c2_37, %c0_38, %c0_39], %42 {strides = array<i32>} : memref<8x12x32xbf16, #tpu.memory_space<vmem>>, vector<1x12x32xbf16>,
    %c3 = arith.constant 3 : index
    %c0_40 = arith.constant 0 : index
    %c0_41 = arith.constant 0 : index
    %43 = vector.load %arg1[%c3, %c0_40, %c0_41] : memref<8x32x8xbf16, #tpu.memory_space<vmem>>, vector<1x32x8xbf16>
    %44 = vector.shape_cast %43 : vector<1x32x8xbf16> to vector<32x8xbf16>
    %cst_42 = arith.constant dense<0.000000e+00> : vector<8x32xf32>
    %45 = tpu.matmul %44, %0, %cst_42 {dimension_numbers = #tpu.dot_dimension_numbers<[0], [0], [1], [1], [0, 1, 1, 1], [], []>} : vector<32x8xbf16>, vector<32x32xbf16>, vector<8x32xf32> -> vector<8x32xf32>
    %46 = arith.truncf %45 : vector<8x32xf32> to vector<8x32xbf16>
    %c3_43 = arith.constant 3 : index
    %c0_44 = arith.constant 0 : index
    %c0_45 = arith.constant 0 : index
    %47 = vector.load %arg9[%c3_43, %c0_44, %c0_45] : memref<8x8x32xbf16, #tpu.memory_space<vmem>>, vector<1x8x32xbf16>
    %48 = vector.shape_cast %47 : vector<1x8x32xbf16> to vector<8x32xbf16>
    %49 = vector.shape_cast %46 : vector<8x32xbf16> to vector<1x8x32xbf16>
    tpu.vector_store %arg9[%c3_43, %c0_44, %c0_45], %49 {strides = array<i32>} : memref<8x8x32xbf16, #tpu.memory_space<vmem>>, vector<1x8x32xbf16>,
    %c3_46 = arith.constant 3 : index
    %c0_47 = arith.constant 0 : index
    %c0_48 = arith.constant 0 : index
    %50 = vector.load %arg2[%c3_46, %c0_47, %c0_48] : memref<8x32x12xbf16, #tpu.memory_space<vmem>>, vector<1x32x12xbf16>
    %51 = vector.shape_cast %50 : vector<1x32x12xbf16> to vector<32x12xbf16>
    %cst_49 = arith.constant dense<0.000000e+00> : vector<12x32xf32>
    %52 = tpu.matmul %51, %0, %cst_49 {dimension_numbers = #tpu.dot_dimension_numbers<[0], [0], [1], [1], [0, 1, 1, 1], [], []>} : vector<32x12xbf16>, vector<32x32xbf16>, vector<12x32xf32> -> vector<12x32xf32>
    %53 = arith.truncf %52 : vector<12x32xf32> to vector<12x32xbf16>
    %c3_50 = arith.constant 3 : index
    %c0_51 = arith.constant 0 : index
    %c0_52 = arith.constant 0 : index
    %54 = vector.load %arg10[%c3_50, %c0_51, %c0_52] : memref<8x12x32xbf16, #tpu.memory_space<vmem>>, vector<1x12x32xbf16>
    %55 = vector.shape_cast %54 : vector<1x12x32xbf16> to vector<12x32xbf16>
    %56 = vector.shape_cast %53 : vector<12x32xbf16> to vector<1x12x32xbf16>
    tpu.vector_store %arg10[%c3_50, %c0_51, %c0_52], %56 {strides = array<i32>} : memref<8x12x32xbf16, #tpu.memory_space<vmem>>, vector<1x12x32xbf16>,
    %c4 = arith.constant 4 : index
    %c0_53 = arith.constant 0 : index
    %c0_54 = arith.constant 0 : index
    %57 = vector.load %arg1[%c4, %c0_53, %c0_54] : memref<8x32x8xbf16, #tpu.memory_space<vmem>>, vector<1x32x8xbf16>
    %58 = vector.shape_cast %57 : vector<1x32x8xbf16> to vector<32x8xbf16>
    %cst_55 = arith.constant dense<0.000000e+00> : vector<8x32xf32>
    %59 = tpu.matmul %58, %0, %cst_55 {dimension_numbers = #tpu.dot_dimension_numbers<[0], [0], [1], [1], [0, 1, 1, 1], [], []>} : vector<32x8xbf16>, vector<32x32xbf16>, vector<8x32xf32> -> vector<8x32xf32>
    %60 = arith.truncf %59 : vector<8x32xf32> to vector<8x32xbf16>
    %c4_56 = arith.constant 4 : index
    %c0_57 = arith.constant 0 : index
    %c0_58 = arith.constant 0 : index
    %61 = vector.load %arg9[%c4_56, %c0_57, %c0_58] : memref<8x8x32xbf16, #tpu.memory_space<vmem>>, vector<1x8x32xbf16>
    %62 = vector.shape_cast %61 : vector<1x8x32xbf16> to vector<8x32xbf16>
    %63 = vector.shape_cast %60 : vector<8x32xbf16> to vector<1x8x32xbf16>
    tpu.vector_store %arg9[%c4_56, %c0_57, %c0_58], %63 {strides = array<i32>} : memref<8x8x32xbf16, #tpu.memory_space<vmem>>, vector<1x8x32xbf16>,
    %c4_59 = arith.constant 4 : index
    %c0_60 = arith.constant 0 : index
    %c0_61 = arith.constant 0 : index
    %64 = vector.load %arg2[%c4_59, %c0_60, %c0_61] : memref<8x32x12xbf16, #tpu.memory_space<vmem>>, vector<1x32x12xbf16>
    %65 = vector.shape_cast %64 : vector<1x32x12xbf16> to vector<32x12xbf16>
    %cst_62 = arith.constant dense<0.000000e+00> : vector<12x32xf32>
    %66 = tpu.matmul %65, %0, %cst_62 {dimension_numbers = #tpu.dot_dimension_numbers<[0], [0], [1], [1], [0, 1, 1, 1], [], []>} : vector<32x12xbf16>, vector<32x32xbf16>, vector<12x32xf32> -> vector<12x32xf32>
    %67 = arith.truncf %66 : vector<12x32xf32> to vector<12x32xbf16>
    %c4_63 = arith.constant 4 : index
    %c0_64 = arith.constant 0 : index
    %c0_65 = arith.constant 0 : index
    %68 = vector.load %arg10[%c4_63, %c0_64, %c0_65] : memref<8x12x32xbf16, #tpu.memory_space<vmem>>, vector<1x12x32xbf16>
    %69 = vector.shape_cast %68 : vector<1x12x32xbf16> to vector<12x32xbf16>
    %70 = vector.shape_cast %67 : vector<12x32xbf16> to vector<1x12x32xbf16>
    tpu.vector_store %arg10[%c4_63, %c0_64, %c0_65], %70 {strides = array<i32>} : memref<8x12x32xbf16, #tpu.memory_space<vmem>>, vector<1x12x32xbf16>,
    %c5 = arith.constant 5 : index
    %c0_66 = arith.constant 0 : index
    %c0_67 = arith.constant 0 : index
    %71 = vector.load %arg1[%c5, %c0_66, %c0_67] : memref<8x32x8xbf16, #tpu.memory_space<vmem>>, vector<1x32x8xbf16>
    %72 = vector.shape_cast %71 : vector<1x32x8xbf16> to vector<32x8xbf16>
    %cst_68 = arith.constant dense<0.000000e+00> : vector<8x32xf32>
    %73 = tpu.matmul %72, %0, %cst_68 {dimension_numbers = #tpu.dot_dimension_numbers<[0], [0], [1], [1], [0, 1, 1, 1], [], []>} : vector<32x8xbf16>, vector<32x32xbf16>, vector<8x32xf32> -> vector<8x32xf32>
    %74 = arith.truncf %73 : vector<8x32xf32> to vector<8x32xbf16>
    %c5_69 = arith.constant 5 : index
    %c0_70 = arith.constant 0 : index
    %c0_71 = arith.constant 0 : index
    %75 = vector.load %arg9[%c5_69, %c0_70, %c0_71] : memref<8x8x32xbf16, #tpu.memory_space<vmem>>, vector<1x8x32xbf16>
    %76 = vector.shape_cast %75 : vector<1x8x32xbf16> to vector<8x32xbf16>
    %77 = vector.shape_cast %74 : vector<8x32xbf16> to vector<1x8x32xbf16>
    tpu.vector_store %arg9[%c5_69, %c0_70, %c0_71], %77 {strides = array<i32>} : memref<8x8x32xbf16, #tpu.memory_space<vmem>>, vector<1x8x32xbf16>,
    %c5_72 = arith.constant 5 : index
    %c0_73 = arith.constant 0 : index
    %c0_74 = arith.constant 0 : index
    %78 = vector.load %arg2[%c5_72, %c0_73, %c0_74] : memref<8x32x12xbf16, #tpu.memory_space<vmem>>, vector<1x32x12xbf16>
    %79 = vector.shape_cast %78 : vector<1x32x12xbf16> to vector<32x12xbf16>
    %cst_75 = arith.constant dense<0.000000e+00> : vector<12x32xf32>
    %80 = tpu.matmul %79, %0, %cst_75 {dimension_numbers = #tpu.dot_dimension_numbers<[0], [0], [1], [1], [0, 1, 1, 1], [], []>} : vector<32x12xbf16>, vector<32x32xbf16>, vector<12x32xf32> -> vector<12x32xf32>
    %81 = arith.truncf %80 : vector<12x32xf32> to vector<12x32xbf16>
    %c5_76 = arith.constant 5 : index
    %c0_77 = arith.constant 0 : index
    %c0_78 = arith.constant 0 : index
    %82 = vector.load %arg10[%c5_76, %c0_77, %c0_78] : memref<8x12x32xbf16, #tpu.memory_space<vmem>>, vector<1x12x32xbf16>
    %83 = vector.shape_cast %82 : vector<1x12x32xbf16> to vector<12x32xbf16>
    %84 = vector.shape_cast %81 : vector<12x32xbf16> to vector<1x12x32xbf16>
    tpu.vector_store %arg10[%c5_76, %c0_77, %c0_78], %84 {strides = array<i32>} : memref<8x12x32xbf16, #tpu.memory_space<vmem>>, vector<1x12x32xbf16>,
    %c6 = arith.constant 6 : index
    %c0_79 = arith.constant 0 : index
    %c0_80 = arith.constant 0 : index
    %85 = vector.load %arg1[%c6, %c0_79, %c0_80] : memref<8x32x8xbf16, #tpu.memory_space<vmem>>, vector<1x32x8xbf16>
    %86 = vector.shape_cast %85 : vector<1x32x8xbf16> to vector<32x8xbf16>
    %cst_81 = arith.constant dense<0.000000e+00> : vector<8x32xf32>
    %87 = tpu.matmul %86, %0, %cst_81 {dimension_numbers = #tpu.dot_dimension_numbers<[0], [0], [1], [1], [0, 1, 1, 1], [], []>} : vector<32x8xbf16>, vector<32x32xbf16>, vector<8x32xf32> -> vector<8x32xf32>
    %88 = arith.truncf %87 : vector<8x32xf32> to vector<8x32xbf16>
    %c6_82 = arith.constant 6 : index
    %c0_83 = arith.constant 0 : index
    %c0_84 = arith.constant 0 : index
    %89 = vector.load %arg9[%c6_82, %c0_83, %c0_84] : memref<8x8x32xbf16, #tpu.memory_space<vmem>>, vector<1x8x32xbf16>
    %90 = vector.shape_cast %89 : vector<1x8x32xbf16> to vector<8x32xbf16>
    %91 = vector.shape_cast %88 : vector<8x32xbf16> to vector<1x8x32xbf16>
    tpu.vector_store %arg9[%c6_82, %c0_83, %c0_84], %91 {strides = array<i32>} : memref<8x8x32xbf16, #tpu.memory_space<vmem>>, vector<1x8x32xbf16>,
    %c6_85 = arith.constant 6 : index
    %c0_86 = arith.constant 0 : index
    %c0_87 = arith.constant 0 : index
    %92 = vector.load %arg2[%c6_85, %c0_86, %c0_87] : memref<8x32x12xbf16, #tpu.memory_space<vmem>>, vector<1x32x12xbf16>
    %93 = vector.shape_cast %92 : vector<1x32x12xbf16> to vector<32x12xbf16>
    %cst_88 = arith.constant dense<0.000000e+00> : vector<12x32xf32>
    %94 = tpu.matmul %93, %0, %cst_88 {dimension_numbers = #tpu.dot_dimension_numbers<[0], [0], [1], [1], [0, 1, 1, 1], [], []>} : vector<32x12xbf16>, vector<32x32xbf16>, vector<12x32xf32> -> vector<12x32xf32>
    %95 = arith.truncf %94 : vector<12x32xf32> to vector<12x32xbf16>
    %c6_89 = arith.constant 6 : index
    %c0_90 = arith.constant 0 : index
    %c0_91 = arith.constant 0 : index
    %96 = vector.load %arg10[%c6_89, %c0_90, %c0_91] : memref<8x12x32xbf16, #tpu.memory_space<vmem>>, vector<1x12x32xbf16>
    %97 = vector.shape_cast %96 : vector<1x12x32xbf16> to vector<12x32xbf16>
    %98 = vector.shape_cast %95 : vector<12x32xbf16> to vector<1x12x32xbf16>
    tpu.vector_store %arg10[%c6_89, %c0_90, %c0_91], %98 {strides = array<i32>} : memref<8x12x32xbf16, #tpu.memory_space<vmem>>, vector<1x12x32xbf16>,
    %c7 = arith.constant 7 : index
    %c0_92 = arith.constant 0 : index
    %c0_93 = arith.constant 0 : index
    %99 = vector.load %arg1[%c7, %c0_92, %c0_93] : memref<8x32x8xbf16, #tpu.memory_space<vmem>>, vector<1x32x8xbf16>
    %100 = vector.shape_cast %99 : vector<1x32x8xbf16> to vector<32x8xbf16>
    %cst_94 = arith.constant dense<0.000000e+00> : vector<8x32xf32>
    %101 = tpu.matmul %100, %0, %cst_94 {dimension_numbers = #tpu.dot_dimension_numbers<[0], [0], [1], [1], [0, 1, 1, 1], [], []>} : vector<32x8xbf16>, vector<32x32xbf16>, vector<8x32xf32> -> vector<8x32xf32>
    %102 = arith.truncf %101 : vector<8x32xf32> to vector<8x32xbf16>
    %c7_95 = arith.constant 7 : index
    %c0_96 = arith.constant 0 : index
    %c0_97 = arith.constant 0 : index
    %103 = vector.load %arg9[%c7_95, %c0_96, %c0_97] : memref<8x8x32xbf16, #tpu.memory_space<vmem>>, vector<1x8x32xbf16>
    %104 = vector.shape_cast %103 : vector<1x8x32xbf16> to vector<8x32xbf16>
    %105 = vector.shape_cast %102 : vector<8x32xbf16> to vector<1x8x32xbf16>
    tpu.vector_store %arg9[%c7_95, %c0_96, %c0_97], %105 {strides = array<i32>} : memref<8x8x32xbf16, #tpu.memory_space<vmem>>, vector<1x8x32xbf16>,
    %c7_98 = arith.constant 7 : index
    %c0_99 = arith.constant 0 : index
    %c0_100 = arith.constant 0 : index
    %106 = vector.load %arg2[%c7_98, %c0_99, %c0_100] : memref<8x32x12xbf16, #tpu.memory_space<vmem>>, vector<1x32x12xbf16>
    %107 = vector.shape_cast %106 : vector<1x32x12xbf16> to vector<32x12xbf16>
    %cst_101 = arith.constant dense<0.000000e+00> : vector<12x32xf32>
    %108 = tpu.matmul %107, %0, %cst_101 {dimension_numbers = #tpu.dot_dimension_numbers<[0], [0], [1], [1], [0, 1, 1, 1], [], []>} : vector<32x12xbf16>, vector<32x32xbf16>, vector<12x32xf32> -> vector<12x32xf32>
    %109 = arith.truncf %108 : vector<12x32xf32> to vector<12x32xbf16>
    %c7_102 = arith.constant 7 : index
    %c0_103 = arith.constant 0 : index
    %c0_104 = arith.constant 0 : index
    %110 = vector.load %arg10[%c7_102, %c0_103, %c0_104] : memref<8x12x32xbf16, #tpu.memory_space<vmem>>, vector<1x12x32xbf16>
    %111 = vector.shape_cast %110 : vector<1x12x32xbf16> to vector<12x32xbf16>
    %112 = vector.shape_cast %109 : vector<12x32xbf16> to vector<1x12x32xbf16>
    tpu.vector_store %arg10[%c7_102, %c0_103, %c0_104], %112 {strides = array<i32>} : memref<8x12x32xbf16, #tpu.memory_space<vmem>>, vector<1x12x32xbf16>,
    %c0_105 = arith.constant 0 : index
    %c0_106 = arith.constant 0 : index
    %c0_107 = arith.constant 0 : index
    %113 = vector.load %arg9[%c0_105, %c0_106, %c0_107] : memref<8x8x32xbf16, #tpu.memory_space<vmem>>, vector<8x8x32xbf16>
    %c0_108 = arith.constant 0 : index
    %c0_109 = arith.constant 0 : index
    %c0_110 = arith.constant 0 : index
    %114 = vector.load %arg10[%c0_108, %c0_109, %c0_110] : memref<8x12x32xbf16, #tpu.memory_space<vmem>>, vector<8x12x32xbf16>
    %cst_111 = arith.constant 0.000000e+00 : f32
    %115 = vector.broadcast %cst_111 : f32 to vector<8x8x12xf32>
    %116 = vector.extract_strided_slice %113 {offsets = [0, 0, 0], sizes = [8, 8, 4], strides = [1, 1, 1]} : vector<8x8x32xbf16> to vector<8x8x4xbf16>
    %117 = vector.extract_strided_slice %114 {offsets = [0, 0, 0], sizes = [8, 12, 4], strides = [1, 1, 1]} : vector<8x12x32xbf16> to vector<8x12x4xbf16>
    "tpu.trace_start"() <{level = 10 : i32, message = "bxc,byc->bxy"}> : () -> ()
    %cst_112 = arith.constant dense<0.000000e+00> : vector<8x8x12xf32>
    %118 = tpu.matmul %116, %117, %cst_112 {dimension_numbers = #tpu.dot_dimension_numbers<[2], [2], [1], [1], [0, 0, 0, 1, 1, 1], [0], [0]>} : vector<8x8x4xbf16>, vector<8x12x4xbf16>, vector<8x8x12xf32> -> vector<8x8x12xf32>
    "tpu.trace_stop"() : () -> ()
    %c0_113 = arith.constant 0 : index
    %119 = memref.load %arg6[%c0_113] : memref<8xf32, #tpu.memory_space<smem>>
    %cst_114 = arith.constant 0.000000e+00 : f32
    %120 = vector.broadcast %cst_114 : f32 to vector<8x8x12xf32>
    %121 = arith.maximumf %118, %120 : vector<8x8x12xf32>
    %122 = vector.broadcast %119 : f32 to vector<8x8x12xf32>
    %123 = arith.mulf %122, %121 : vector<8x8x12xf32>
    %124 = arith.addf %115, %123 : vector<8x8x12xf32>
    %125 = vector.extract_strided_slice %113 {offsets = [0, 0, 4], sizes = [8, 8, 4], strides = [1, 1, 1]} : vector<8x8x32xbf16> to vector<8x8x4xbf16>
    %126 = vector.extract_strided_slice %114 {offsets = [0, 0, 4], sizes = [8, 12, 4], strides = [1, 1, 1]} : vector<8x12x32xbf16> to vector<8x12x4xbf16>
    "tpu.trace_start"() <{level = 10 : i32, message = "bxc,byc->bxy"}> : () -> ()
    %cst_115 = arith.constant dense<0.000000e+00> : vector<8x8x12xf32>
    %127 = tpu.matmul %125, %126, %cst_115 {dimension_numbers = #tpu.dot_dimension_numbers<[2], [2], [1], [1], [0, 0, 0, 1, 1, 1], [0], [0]>} : vector<8x8x4xbf16>, vector<8x12x4xbf16>, vector<8x8x12xf32> -> vector<8x8x12xf32>
    "tpu.trace_stop"() : () -> ()
    %c1_116 = arith.constant 1 : index
    %128 = memref.load %arg6[%c1_116] : memref<8xf32, #tpu.memory_space<smem>>
    %cst_117 = arith.constant 0.000000e+00 : f32
    %129 = vector.broadcast %cst_117 : f32 to vector<8x8x12xf32>
    %130 = arith.maximumf %127, %129 : vector<8x8x12xf32>
    %131 = vector.broadcast %128 : f32 to vector<8x8x12xf32>
    %132 = arith.mulf %131, %130 : vector<8x8x12xf32>
    %133 = arith.addf %124, %132 : vector<8x8x12xf32>
    %134 = vector.extract_strided_slice %113 {offsets = [0, 0, 8], sizes = [8, 8, 4], strides = [1, 1, 1]} : vector<8x8x32xbf16> to vector<8x8x4xbf16>
    %135 = vector.extract_strided_slice %114 {offsets = [0, 0, 8], sizes = [8, 12, 4], strides = [1, 1, 1]} : vector<8x12x32xbf16> to vector<8x12x4xbf16>
    "tpu.trace_start"() <{level = 10 : i32, message = "bxc,byc->bxy"}> : () -> ()
    %cst_118 = arith.constant dense<0.000000e+00> : vector<8x8x12xf32>
    %136 = tpu.matmul %134, %135, %cst_118 {dimension_numbers = #tpu.dot_dimension_numbers<[2], [2], [1], [1], [0, 0, 0, 1, 1, 1], [0], [0]>} : vector<8x8x4xbf16>, vector<8x12x4xbf16>, vector<8x8x12xf32> -> vector<8x8x12xf32>
    "tpu.trace_stop"() : () -> ()
    %c2_119 = arith.constant 2 : index
    %137 = memref.load %arg6[%c2_119] : memref<8xf32, #tpu.memory_space<smem>>
    %cst_120 = arith.constant 0.000000e+00 : f32
    %138 = vector.broadcast %cst_120 : f32 to vector<8x8x12xf32>
    %139 = arith.maximumf %136, %138 : vector<8x8x12xf32>
    %140 = vector.broadcast %137 : f32 to vector<8x8x12xf32>
    %141 = arith.mulf %140, %139 : vector<8x8x12xf32>
    %142 = arith.addf %133, %141 : vector<8x8x12xf32>
    %143 = vector.extract_strided_slice %113 {offsets = [0, 0, 12], sizes = [8, 8, 4], strides = [1, 1, 1]} : vector<8x8x32xbf16> to vector<8x8x4xbf16>
    %144 = vector.extract_strided_slice %114 {offsets = [0, 0, 12], sizes = [8, 12, 4], strides = [1, 1, 1]} : vector<8x12x32xbf16> to vector<8x12x4xbf16>
    "tpu.trace_start"() <{level = 10 : i32, message = "bxc,byc->bxy"}> : () -> ()
    %cst_121 = arith.constant dense<0.000000e+00> : vector<8x8x12xf32>
    %145 = tpu.matmul %143, %144, %cst_121 {dimension_numbers = #tpu.dot_dimension_numbers<[2], [2], [1], [1], [0, 0, 0, 1, 1, 1], [0], [0]>} : vector<8x8x4xbf16>, vector<8x12x4xbf16>, vector<8x8x12xf32> -> vector<8x8x12xf32>
    "tpu.trace_stop"() : () -> ()
    %c3_122 = arith.constant 3 : index
    %146 = memref.load %arg6[%c3_122] : memref<8xf32, #tpu.memory_space<smem>>
    %cst_123 = arith.constant 0.000000e+00 : f32
    %147 = vector.broadcast %cst_123 : f32 to vector<8x8x12xf32>
    %148 = arith.maximumf %145, %147 : vector<8x8x12xf32>
    %149 = vector.broadcast %146 : f32 to vector<8x8x12xf32>
    %150 = arith.mulf %149, %148 : vector<8x8x12xf32>
    %151 = arith.addf %142, %150 : vector<8x8x12xf32>
    %152 = vector.extract_strided_slice %113 {offsets = [0, 0, 16], sizes = [8, 8, 4], strides = [1, 1, 1]} : vector<8x8x32xbf16> to vector<8x8x4xbf16>
    %153 = vector.extract_strided_slice %114 {offsets = [0, 0, 16], sizes = [8, 12, 4], strides = [1, 1, 1]} : vector<8x12x32xbf16> to vector<8x12x4xbf16>
    "tpu.trace_start"() <{level = 10 : i32, message = "bxc,byc->bxy"}> : () -> ()
    %cst_124 = arith.constant dense<0.000000e+00> : vector<8x8x12xf32>
    %154 = tpu.matmul %152, %153, %cst_124 {dimension_numbers = #tpu.dot_dimension_numbers<[2], [2], [1], [1], [0, 0, 0, 1, 1, 1], [0], [0]>} : vector<8x8x4xbf16>, vector<8x12x4xbf16>, vector<8x8x12xf32> -> vector<8x8x12xf32>
    "tpu.trace_stop"() : () -> ()
    %c4_125 = arith.constant 4 : index
    %155 = memref.load %arg6[%c4_125] : memref<8xf32, #tpu.memory_space<smem>>
    %cst_126 = arith.constant 0.000000e+00 : f32
    %156 = vector.broadcast %cst_126 : f32 to vector<8x8x12xf32>
    %157 = arith.maximumf %154, %156 : vector<8x8x12xf32>
    %158 = vector.broadcast %155 : f32 to vector<8x8x12xf32>
    %159 = arith.mulf %158, %157 : vector<8x8x12xf32>
    %160 = arith.addf %151, %159 : vector<8x8x12xf32>
    %161 = vector.extract_strided_slice %113 {offsets = [0, 0, 20], sizes = [8, 8, 4], strides = [1, 1, 1]} : vector<8x8x32xbf16> to vector<8x8x4xbf16>
    %162 = vector.extract_strided_slice %114 {offsets = [0, 0, 20], sizes = [8, 12, 4], strides = [1, 1, 1]} : vector<8x12x32xbf16> to vector<8x12x4xbf16>
    "tpu.trace_start"() <{level = 10 : i32, message = "bxc,byc->bxy"}> : () -> ()
    %cst_127 = arith.constant dense<0.000000e+00> : vector<8x8x12xf32>
    %163 = tpu.matmul %161, %162, %cst_127 {dimension_numbers = #tpu.dot_dimension_numbers<[2], [2], [1], [1], [0, 0, 0, 1, 1, 1], [0], [0]>} : vector<8x8x4xbf16>, vector<8x12x4xbf16>, vector<8x8x12xf32> -> vector<8x8x12xf32>
    "tpu.trace_stop"() : () -> ()
    %c5_128 = arith.constant 5 : index
    %164 = memref.load %arg6[%c5_128] : memref<8xf32, #tpu.memory_space<smem>>
    %cst_129 = arith.constant 0.000000e+00 : f32
    %165 = vector.broadcast %cst_129 : f32 to vector<8x8x12xf32>
    %166 = arith.maximumf %163, %165 : vector<8x8x12xf32>
    %167 = vector.broadcast %164 : f32 to vector<8x8x12xf32>
    %168 = arith.mulf %167, %166 : vector<8x8x12xf32>
    %169 = arith.addf %160, %168 : vector<8x8x12xf32>
    %170 = vector.extract_strided_slice %113 {offsets = [0, 0, 24], sizes = [8, 8, 4], strides = [1, 1, 1]} : vector<8x8x32xbf16> to vector<8x8x4xbf16>
    %171 = vector.extract_strided_slice %114 {offsets = [0, 0, 24], sizes = [8, 12, 4], strides = [1, 1, 1]} : vector<8x12x32xbf16> to vector<8x12x4xbf16>
    "tpu.trace_start"() <{level = 10 : i32, message = "bxc,byc->bxy"}> : () -> ()
    %cst_130 = arith.constant dense<0.000000e+00> : vector<8x8x12xf32>
    %172 = tpu.matmul %170, %171, %cst_130 {dimension_numbers = #tpu.dot_dimension_numbers<[2], [2], [1], [1], [0, 0, 0, 1, 1, 1], [0], [0]>} : vector<8x8x4xbf16>, vector<8x12x4xbf16>, vector<8x8x12xf32> -> vector<8x8x12xf32>
    "tpu.trace_stop"() : () -> ()
    %c6_131 = arith.constant 6 : index
    %173 = memref.load %arg6[%c6_131] : memref<8xf32, #tpu.memory_space<smem>>
    %cst_132 = arith.constant 0.000000e+00 : f32
    %174 = vector.broadcast %cst_132 : f32 to vector<8x8x12xf32>
    %175 = arith.maximumf %172, %174 : vector<8x8x12xf32>
    %176 = vector.broadcast %173 : f32 to vector<8x8x12xf32>
    %177 = arith.mulf %176, %175 : vector<8x8x12xf32>
    %178 = arith.addf %169, %177 : vector<8x8x12xf32>
    %179 = vector.extract_strided_slice %113 {offsets = [0, 0, 28], sizes = [8, 8, 4], strides = [1, 1, 1]} : vector<8x8x32xbf16> to vector<8x8x4xbf16>
    %180 = vector.extract_strided_slice %114 {offsets = [0, 0, 28], sizes = [8, 12, 4], strides = [1, 1, 1]} : vector<8x12x32xbf16> to vector<8x12x4xbf16>
    "tpu.trace_start"() <{level = 10 : i32, message = "bxc,byc->bxy"}> : () -> ()
    %cst_133 = arith.constant dense<0.000000e+00> : vector<8x8x12xf32>
    %181 = tpu.matmul %179, %180, %cst_133 {dimension_numbers = #tpu.dot_dimension_numbers<[2], [2], [1], [1], [0, 0, 0, 1, 1, 1], [0], [0]>} : vector<8x8x4xbf16>, vector<8x12x4xbf16>, vector<8x8x12xf32> -> vector<8x8x12xf32>
    "tpu.trace_stop"() : () -> ()
    %c7_134 = arith.constant 7 : index
    %182 = memref.load %arg6[%c7_134] : memref<8xf32, #tpu.memory_space<smem>>
    %cst_135 = arith.constant 0.000000e+00 : f32
    %183 = vector.broadcast %cst_135 : f32 to vector<8x8x12xf32>
    %184 = arith.maximumf %181, %183 : vector<8x8x12xf32>
    %185 = vector.broadcast %182 : f32 to vector<8x8x12xf32>
    %186 = arith.mulf %185, %184 : vector<8x8x12xf32>
    %187 = arith.addf %178, %186 : vector<8x8x12xf32>
    %c0_136 = arith.constant 0 : index
    %c0_137 = arith.constant 0 : index
    %c0_138 = arith.constant 0 : index
    %188 = vector.load %arg3[%c0_136, %c0_137, %c0_138] : memref<8x8x12xi8, #tpu.memory_space<vmem>>, vector<8x8x12xi8>
    %189 = arith.sitofp %188 : vector<8x8x12xi8> to vector<8x8x12xf32>
    %190 = arith.mulf %187, %189 : vector<8x8x12xf32>
    %cst_139 = arith.constant dense<0.000000e+00> : vector<8x8xf32>
    %191 = vector.multi_reduction <add>, %190, %cst_139 [2] : vector<8x8x12xf32> to vector<8x8xf32>
    %cst_140 = arith.constant dense<0.000000e+00> : vector<8xf32>
    %192 = vector.multi_reduction <add>, %191, %cst_140 [1] : vector<8x8xf32> to vector<8xf32>
    %c0_141 = arith.constant 0 : index
    %c0_142 = arith.constant 0 : index
    %c0_143 = arith.constant 0 : index
    %193 = vector.load %arg4[%c0_141, %c0_142, %c0_143] : memref<1x1x8xf32, #tpu.memory_space<vmem>>, vector<1x1x8xf32>
    %194 = vector.shape_cast %193 : vector<1x1x8xf32> to vector<8xf32>
    %195 = arith.mulf %192, %194 : vector<8xf32>
    %c0_144 = arith.constant 0 : index
    %196 = memref.load %arg7[%c0_144] : memref<1xf32, #tpu.memory_space<smem>>
    %197 = vector.broadcast %196 : f32 to vector<8xf32>
    %198 = arith.addf %195, %197 : vector<8xf32>
    %199 = vector.shape_cast %198 : vector<8xf32> to vector<1x1x8xf32>
    %c0_145 = arith.constant 0 : index
    %c0_146 = arith.constant 0 : index
    %c0_147 = arith.constant 0 : index
    %200 = vector.load %arg8[%c0_145, %c0_146, %c0_147] : memref<1x1x8xf32, #tpu.memory_space<vmem>>, vector<1x1x8xf32>
    tpu.vector_store %arg8[%c0_145, %c0_146, %c0_147], %199 {strides = array<i32>} : memref<1x1x8xf32, #tpu.memory_space<vmem>>, vector<1x1x8xf32>,
    return
  }
  func.func @transform_0(%arg0: i32) -> (i32, i32, i32) {
    %c0_i32 = arith.constant 0 : i32
    %c0_i32_0 = arith.constant 0 : i32
    %c0_i32_1 = arith.constant 0 : i32
    return %arg0, %c0_i32, %c0_i32_0 : i32, i32, i32
  }
  func.func @transform_1(%arg0: i32) -> (i32, i32, i32) {
    %c0_i32 = arith.constant 0 : i32
    %c0_i32_0 = arith.constant 0 : i32
    %c0_i32_1 = arith.constant 0 : i32
    return %arg0, %c0_i32, %c0_i32_0 : i32, i32, i32
  }
  func.func @transform_2(%arg0: i32) -> (i32, i32, i32) {
    %c0_i32 = arith.constant 0 : i32
    %c0_i32_0 = arith.constant 0 : i32
    %c0_i32_1 = arith.constant 0 : i32
    return %arg0, %c0_i32, %c0_i32_0 : i32, i32, i32
  }
  func.func @transform_3(%arg0: i32) -> (i32, i32, i32) {
    %c0_i32 = arith.constant 0 : i32
    %c0_i32_0 = arith.constant 0 : i32
    %c0_i32_1 = arith.constant 0 : i32
    return %arg0, %c0_i32, %c0_i32_0 : i32, i32, i32
  }
  func.func @transform_4(%arg0: i32) -> (i32, i32) {
    %c0_i32 = arith.constant 0 : i32
    %c0_i32_0 = arith.constant 0 : i32
    %c0_i32_1 = arith.constant 0 : i32
    return %c0_i32, %c0_i32_0 : i32, i32
  }
  func.func @transform_5(%arg0: i32) -> i32 {
    %c0_i32 = arith.constant 0 : i32
    %c0_i32_0 = arith.constant 0 : i32
    return %c0_i32 : i32
  }
  func.func @transform_6(%arg0: i32) -> i32 {
    %c0_i32 = arith.constant 0 : i32
    %c0_i32_0 = arith.constant 0 : i32
    return %c0_i32 : i32
  }
  func.func @transform_7(%arg0: i32) -> (i32, i32, i32) {
    %c0_i32 = arith.constant 0 : i32
    %c0_i32_0 = arith.constant 0 : i32
    %c0_i32_1 = arith.constant 0 : i32
    return %arg0, %c0_i32, %c0_i32_0 : i32, i32, i32
  }
}

</mosaic_0001>

<bundles_post_ra>
// kernel: tpu_custom_call.1
= control target key start
LH: loop header
LB: loop body
LE: loop exit
PB: predicated region body
PF: predicated region fallthrough
CT: control target
= control target key end

     0   :  { %s7664_s0 = inlined_call_operand.vmem [shape: bf16[16,32,8], index: 0, kind: input, shape index: {}]   ;;  %s7665_s1 = inlined_call_operand.vmem [shape: bf16[16,32,12], index: 1, kind: input, shape index: {}]   ;;  %s7666_s2 = inlined_call_operand.vmem [shape: s8[16,8,12], index: 2, kind: input, shape index: {}]   ;;  %s7667_s3 = inlined_call_operand.vmem [shape: f32[2,1,8], index: 3, kind: input, shape index: {}]   ;;  %s7668_s4 = inlined_call_operand.vmem [shape: bf16[32,32], index: 4, kind: input, shape index: {}]   ;;  %s7669_s5 = inlined_call_operand.vmem [shape: f32[8], index: 5, kind: input, shape index: {}]   ;;  %s7670_s6 = inlined_call_operand.<no memory space> [shape: f32[1], index: 6, kind: input, shape index: {}]   ;;  %s7671_s7 = inlined_call_operand.hbm [shape: f32[2,1,8], index: 7, kind: output, shape index: {}]  }
   0x1   :  { %12 = sst [smem:[#allocation4]] %s7670_s6 }
   0x2   :  { %13 = vsyncpa [#allocation7], 0 }
   0x3   :  { %14 = vsyncpa [#allocation6], 0 }
   0x4   :  { %16 = vsyncpa [#allocation6 + $0x1], 0  ;;  %s6629_s26 = smov 0   ;;  %s6631_s27 = smov 0  }
   0x5   :  { %s6633_s28 = smov 0   ;;  %s6635_s29 = smov 0  }
   0x6 LB: > { %s6650_s6 = sadd.s32 4294967295, %s6572_s29   ;;  %s5430_s30 = sadd.s32 4294967294, %s6572_s29   ;;  %s6572_s29 = sphi %s6635_s29, %s7678_s29   ;;  %s6568_s28 = sphi %s6633_s28, %s7677_s28   ;;  %s6564_s27 = sphi %s6631_s27, %s7676_s27   ;;  %s6560_s26 = sphi %s6629_s26, %s7675_s26  }
   0x7   : > { %s6654_s8 = sadd.s32 1, %s6572_s29   ;;  %s196_s9 = sadd.s32 1, %s6568_s28 }
   0x8   : > { %s193_s10 = ssub.s32 %s6572_s29, %s6654_s8  ;;  %p206_p0 = scmp.ne.s32.totalorder %s6568_s28, %s6564_s27 }
   0x9   : > { %p194_p1 = scmp.eq.s32.totalorder %s193_s10, 0  ;;  %p207_p2 = scmp.eq.s32.totalorder %s6650_s6, 1 }
   0xa   : > { %p212_p3 = scmp.ne.s32.totalorder %s6564_s27, %s6560_s26  ;;  %p213_p4 = scmp.eq.s32.totalorder %s5430_s30, 1 }
   0xb   : > { %s6665_s11 = scalar_select %p194_p1, %s6568_s28, %s196_s9  }
   0xc   : > { %p6667_p5 = por %p207_p2, %p206_p0  ;;  %p6671_p6 = por %p213_p4, %p212_p3 }
   0xd   : > { %p5431_p7 = scmp.ge.s32.totalorder %s6572_s29, 1  ;;  %p220_p8 = scmp.lt.s32.totalorder %s6572_s29, 3 }
   0xe   : > { %p6396_p9 = scmp.eq.s32.totalorder %s6650_s6, 0  ;;  %s236_s17 = sshll.u32 %s7669_s5, 4  ;;  %s237_s17 = int_to_ptr.vmem [resolvable:$true] %s236_s17 }
   0xf   : > { %p6678_p10 = pnand %p5431_p7, %p220_p8  ;;  %s6493_s18 = scalar_lea.vmem %s237_s17, 16 }
  0x10   : > { %p6494_p13 = scmp.ne.s32.totalorder %s237_s17, %s6493_s18  ;;  %p6501_p3 = scmp.lt.s32.totalorder %s237_s17, %s237_s17 }
  0x11   : > { %p6388_p11 = pneg %p6678_p10  ;;  %p6502_p4 = scmp.lt.s32.totalorder %s6493_s18, %s6493_s18 }
  0x13   : > { %p6389_p12 = pnand %p6396_p9, %p6388_p11  ;;  %p6503_p7 = por %p6502_p4, %p6501_p3 }
  0x15   : > { %p6495_p0 = pneg %p6389_p12 }
  0x17   : > { %p6496_p1 = pnand %p6495_p0, %p6494_p13 }
  0x19   : > { %p6497_p2 = pneg %p6496_p1 }
  0x1b   : > { %p6504_p8 = pnand %p6503_p7, %p6497_p2 }
  0x1d   : > { %6507 = shalt.err (!%p6504_p8)
}
  0x1e   : > { %s6574_s19 = smov [#allocation5]   ;;  %287 = sbr.rel (%p6678_p10) target bundleno = 1348 (0x544), region = 48 }
  0x1f   : > { %6391 = dma.vmem_to_smem (!%p6389_p12), %s237_s17, 16, %s6574_s19, [#allocation7]  }
  0x23   : > { %6551 = dma.done.wait (%p6396_p9), [#allocation7], 16  }
  0x24   : > { %6553 = vsyncadd (%p6396_p9), [#allocation7], 4294967280 }
  0x25   : > { %293 = sfence }
  0x26   : > { %s5436_s20 = sshll.u32 %s6650_s6, 3  ;;  %v6575_v0 = vmov 0.0   ;;  %v6700_v1 = vld [vmem:[%s7668_s4 + $0x8] sm:$0xff]   ;;  %v6709_v2 = vld [vmem:[%s7668_s4] sm:$0xff]   ;;  %vm6576_vm0 = vmmov 0   ;;  %vm406_vm1 = vcmask 261120  }
  0x27   : > { %p335_p11 = scmp.lt.s32.totalorder %s5436_s20, 15  ;;  %5875 = vmatprep.subr.bf16.mxu1 %v6575_v0  ;;  %5867 = vmatprep.subr.bf16.mxu0 %v6575_v0  ;;  %vm451_vm2 = vcmask 257024   ;;  %vm538_vm3 = vcmask 254976   ;;  %vm1738_vm4 = vcmask 31744   ;;  %s6577_s17 = smov 124   ;;  %vm5206_vm5 = vcmask 97280  }
  0x28   : > { %5876 = vmatpush3.bf16.msra.mxu1 %v6700_v1  ;;  %5879 = vmatprep.mubr.msk.bf16.mxu1 %vm6576_vm0, %v6575_v0  ;;  %s6578_s18 = smov 120   ;;  %s6579_s19 = smov 116   ;;  %vm5273_vm6 = vcmask 1041409   ;;  %vm5275_vm7 = vcmask 1042434   ;;  %vm5277_vm8 = vcmask 1043459   ;;  %vm5279_vm9 = vcmask 1044484  }
  0x29   : > { %s7680_s20 = smov (!%p335_p11, %s5436_s20), 15  ;;  %5877 = vmatprep.subr.bf16.mxu1 %v6575_v0  ;;  %5868 = vmatpush3.bf16.msra.mxu0 %v6700_v1  ;;  %s6580_s21 = smov 112   ;;  %vm5281_vm10 = vcmask 1045509   ;;  %vm5283_vm11 = vcmask 1046534   ;;  %vm5285_vm12 = vcmask 1047559   ;;  %vm5288_vm13 = vcmask 64512  }
  0x2a   : > { %s5657_s25 = sshll.u32 %s7680_s20, 4  ;;  %5869 = vmatprep.subr.bf16.mxu0 %v6575_v0  ;;  %5871 = vmatprep.mubr.msk.bf16.mxu0 %vm6576_vm0, %v6575_v0  ;;  %s6581_s22 = smov 108   ;;  %vm5315_vm14 = vcmask 57344  }
  0x2b   : > { %s6722_s10 = scalar_lea.vmem %s7665_s1, %s5657_s25  ;;  %s6733_s16 = scalar_lea.vmem %s7664_s0, %s5657_s25 }
  0x2c   : > { %v6443_v3 = vld [vmem:[%s6722_s10] sm:$0xff]   ;;  %5878 = vmatpush3.bf16.msra.mxu1 %v6709_v2  ;;  %v6444_v4 = vld [vmem:[%s6722_s10 + $0x8] sm:$0xff]   ;;  %v6445_v5 = vld [vmem:[%s6722_s10 + $0x10] sm:$0xff]   ;;  %s6582_s23 = smov 104   ;;  %s6583_s24 = smov 100  }
  0x2d   : > { %5891 = vmatprep.subr.bf16.mxu1 %v6575_v0  ;;  %5870 = vmatpush3.bf16.msra.mxu0 %v6709_v2  ;;  %v6447_v6 = vld [vmem:[%s6722_s10 + $0x18] sm:$0xff]   ;;  %v6446_v7 = vld [vmem:[%s6733_s16] sm:$0xff]   ;;  %v6448_v9 = vld [vmem:[%s6733_s16 + $0x8] sm:$0xff]   ;;  %s2142_s25 = sld [smem:[#allocation5]]  ;;  %p354_p9 = scmp.lt.s32.totalorder %s6650_s6, 1 }
  0x2e   : > { %469 = vxpose.xlu0.c.b16.start [1/2] (short) (narrow) %v6443_v3, 16  ;;  %5883 = vmatprep.subr.bf16.mxu0 %v6575_v0  ;;  %v6449_v8 = vld [vmem:[%s6722_s10 + $0x20] sm:$0xff]   ;;  %v6451_v10 = vld [vmem:[%s6722_s10 + $0x28] sm:$0xff]   ;;  %v6450_v11 = vld [vmem:[%s6733_s16 + $0x10] sm:$0xff]   ;;  %s5598_s30 = sld [smem:[#allocation5 + $0x1]] }
  0x2f   : > { %636 = vxpose.xlu1.c.b16.start [1/2] (short) (narrow) %v6445_v5, 16  ;;  %v6453_v12 = vld [vmem:[%s6722_s10 + $0x30] sm:$0xff]   ;;  %v6452_v13 = vld [vmem:[%s6733_s16 + $0x18] sm:$0xff]   ;;  %v6454_v15 = vld [vmem:[%s6733_s16 + $0x20] sm:$0xff]   ;;  %s5607_s9 = sld [smem:[#allocation5 + $0x2]] }
  0x30   : > { %v6455_v14 = vld [vmem:[%s6722_s10 + $0x38] sm:$0xff]   ;;  %v6457_v16 = vld [vmem:[%s6722_s10 + $0x40] sm:$0xff]   ;;  %v6456_v17 = vld [vmem:[%s6733_s16 + $0x28] sm:$0xff]   ;;  %s5625_s14 = sld [smem:[#allocation5 + $0x4]] }
  0x31   : > { %v6459_v18 = vld [vmem:[%s6722_s10 + $0x48] sm:$0xff]   ;;  %v6458_v19 = vld [vmem:[%s6733_s16 + $0x30] sm:$0xff]   ;;  %v6460_v21 = vld [vmem:[%s6733_s16 + $0x38] sm:$0xff]   ;;  %s5634_s15 = sld [smem:[#allocation5 + $0x5]] }
  0x32   : > { %470 = vxpose.xlu0.c.b16.end [2/2] (short) (narrow) %v6444_v4, 16  ;;  %v6461_v20 = vld [vmem:[%s6722_s10 + $0x50] sm:$0xff]   ;;  %v6463_v22 = vld [vmem:[%s6722_s10 + $0x58] sm:$0xff]   ;;  %v6462_v23 = vld [vmem:[%s6733_s16 + $0x40] sm:$0xff]  }
  0x33   : > { %637 = vxpose.xlu1.c.b16.end [2/2] (short) (narrow) %v6447_v6, 16  ;;  %v6465_v24 = vld [vmem:[%s6722_s10 + $0x60] sm:$0xff]   ;;  %v6464_v25 = vld [vmem:[%s6733_s16 + $0x48] sm:$0xff]   ;;  %v6466_v27 = vld [vmem:[%s6733_s16 + $0x50] sm:$0xff]  }
  0x34   : > { %v6467_v26 = vld [vmem:[%s6722_s10 + $0x68] sm:$0xff]   ;;  %v6469_v28 = vld [vmem:[%s6722_s10 + $0x70] sm:$0xff]   ;;  %v6468_v29 = vld [vmem:[%s6733_s16 + $0x58] sm:$0xff]  }
  0x35   : > { %v6471_v30 = vld [vmem:[%s6722_s10 + $0x78] sm:$0xff]   ;;  %v6470_v31 = vld [vmem:[%s6733_s16 + $0x60] sm:$0xff]   ;;  %v6473_v32 = vld [vmem:[%s6733_s16 + $0x70] sm:$0xff]   ;;  %s5616_s10 = sld [smem:[#allocation5 + $0x3]] }
  0x36   : > { %378 = vxpose.xlu0.c.b16.start [1/2] (short) (narrow) %v6446_v7, 16  ;;  %v6472_v33 = vld [vmem:[%s6733_s16 + $0x68] sm:$0xff]   ;;  %v6474_v34 = vld [vmem:[%s6733_s16 + $0x78] sm:$0xff]   ;;  %s5643_s16 = sld [smem:[#allocation5 + $0x6]] }
  0x37   : > { %803 = vxpose.xlu1.c.b16.start [1/2] (short) (narrow) %v6449_v8, 16 }
  0x3a   : > { %379 = vxpose.xlu0.c.b16.end [2/2] (short) (narrow) %v6448_v9, 16 }
  0x3b   : > { %804 = vxpose.xlu1.c.b16.end [2/2] (short) (narrow) %v6451_v10, 16 }
  0x3e   : > { %557 = vxpose.xlu0.c.b16.start [1/2] (short) (narrow) %v6450_v11, 16 }
  0x3f   : > { %970 = vxpose.xlu1.c.b16.start [1/2] (short) (narrow) %v6453_v12, 16 }
  0x42   : > { %558 = vxpose.xlu0.c.b16.end [2/2] (short) (narrow) %v6452_v13, 16 }
  0x43   : > { %971 = vxpose.xlu1.c.b16.end [2/2] (short) (narrow) %v6455_v14, 16 }
  0x46   : > { %724 = vxpose.xlu0.c.b16.start [1/2] (short) (narrow) %v6454_v15, 16 }
  0x47   : > { %1137 = vxpose.xlu1.c.b16.start [1/2] (short) (narrow) %v6457_v16, 16 }
  0x4a   : > { %725 = vxpose.xlu0.c.b16.end [2/2] (short) (narrow) %v6456_v17, 16 }
  0x4b   : > { %1138 = vxpose.xlu1.c.b16.end [2/2] (short) (narrow) %v6459_v18, 16 }
  0x4e   : > { %891 = vxpose.xlu0.c.b16.start [1/2] (short) (narrow) %v6458_v19, 16 }
  0x4f   : > { %1304 = vxpose.xlu1.c.b16.start [1/2] (short) (narrow) %v6461_v20, 16 }
  0x52   : > { %892 = vxpose.xlu0.c.b16.end [2/2] (short) (narrow) %v6460_v21, 16 }
  0x53   : > { %1305 = vxpose.xlu1.c.b16.end [2/2] (short) (narrow) %v6463_v22, 16 }
  0x56   : > { %1058 = vxpose.xlu0.c.b16.start [1/2] (short) (narrow) %v6462_v23, 16 }
  0x57   : > { %1471 = vxpose.xlu1.c.b16.start [1/2] (short) (narrow) %v6465_v24, 16 }
  0x5a   : > { %1059 = vxpose.xlu0.c.b16.end [2/2] (short) (narrow) %v6464_v25, 16 }
  0x5b   : > { %1472 = vxpose.xlu1.c.b16.end [2/2] (short) (narrow) %v6467_v26, 16 }
  0x5e   : > { %1225 = vxpose.xlu0.c.b16.start [1/2] (short) (narrow) %v6466_v27, 16 }
  0x5f   : > { %1638 = vxpose.xlu1.c.b16.start [1/2] (short) (narrow) %v6469_v28, 16 }
  0x62   : > { %1226 = vxpose.xlu0.c.b16.end [2/2] (short) (narrow) %v6468_v29, 16 }
  0x63   : > { %1639 = vxpose.xlu1.c.b16.end [2/2] (short) (narrow) %v6471_v30, 16 }
  0x66   : > { %1392 = vxpose.xlu0.c.b16.start [1/2] (short) (narrow) %v6470_v31, 16 }
  0x67   : > { %1559 = vxpose.xlu1.c.b16.start [1/2] (short) (narrow) %v6473_v32, 16 }
  0x6a   : > { %1393 = vxpose.xlu0.c.b16.end [2/2] (short) (narrow) %v6472_v33, 16 }
  0x6b   : > { %1560 = vxpose.xlu1.c.b16.end [2/2] (short) (narrow) %v6474_v34, 16 }
  0x90   : > { %v477_v35 = vpop.trf.xlu0 }
  0x91   : > { %5880 = vmatmul.mubr.msk.bf16.vlgmr.msra.gmra.mxu1 %vm406_vm1, %v477_v35  ;;  %v644_v36 = vpop.trf.xlu1 }
  0x92   : > { %5892 = vmatpush3.bf16.msra.mxu1 %v6700_v1  ;;  %5895 = vmatprep.mubr.msk.bf16.mxu1 %vm6576_vm0, %v6575_v0 }
  0x93   : > { %5893 = vmatprep.subr.bf16.mxu1 %v6575_v0 }
  0x96   : > { %5894 = vmatpush3.bf16.msra.mxu1 %v6709_v2 }
  0x97   : > { %5907 = vmatprep.subr.bf16.mxu1 %v6575_v0 }
  0x98   : > { %v386_v37 = vpop.trf.xlu0 }
  0x99   : > { %5872 = vmatmul.mubr.msk.bf16.vlgmr.msra.gmra.mxu0 %vm406_vm1, %v386_v37  ;;  %5896 = vmatmul.mubr.msk.bf16.vlgmr.msra.gmra.mxu1 %vm406_vm1, %v644_v36  ;;  %v811_v38 = vpop.trf.xlu1 }
  0x9a   : > { %5884 = vmatpush3.bf16.msra.mxu0 %v6700_v1  ;;  %5908 = vmatpush3.bf16.msra.mxu1 %v6700_v1 }
  0x9b   : > { %5885 = vmatprep.subr.bf16.mxu0 %v6575_v0  ;;  %5909 = vmatprep.subr.bf16.mxu1 %v6575_v0 }
  0x9c   : > { %5887 = vmatprep.mubr.msk.bf16.mxu0 %vm6576_vm0, %v6575_v0  ;;  %5911 = vmatprep.mubr.msk.bf16.mxu1 %vm6576_vm0, %v6575_v0 }
  0x9e   : > { %5886 = vmatpush3.bf16.msra.mxu0 %v6709_v2  ;;  %5910 = vmatpush3.bf16.msra.mxu1 %v6709_v2 }
  0x9f   : > { %5899 = vmatprep.subr.bf16.mxu0 %v6575_v0  ;;  %5923 = vmatprep.subr.bf16.mxu1 %v6575_v0 }
  0xa0   : > { %v565_v39 = vpop.trf.xlu0 }
  0xa1   : > { %5888 = vmatmul.mubr.msk.bf16.vlgmr.msra.gmra.mxu0 %vm406_vm1, %v565_v39  ;;  %5912 = vmatmul.mubr.msk.bf16.vlgmr.msra.gmra.mxu1 %vm406_vm1, %v811_v38  ;;  %v978_v40 = vpop.trf.xlu1 }
  0xa2   : > { %5900 = vmatpush3.bf16.msra.mxu0 %v6700_v1  ;;  %5924 = vmatpush3.bf16.msra.mxu1 %v6700_v1 }
  0xa3   : > { %5901 = vmatprep.subr.bf16.mxu0 %v6575_v0  ;;  %5925 = vmatprep.subr.bf16.mxu1 %v6575_v0 }
  0xa4   : > { %5903 = vmatprep.mubr.msk.bf16.mxu0 %vm6576_vm0, %v6575_v0  ;;  %5927 = vmatprep.mubr.msk.bf16.mxu1 %vm6576_vm0, %v6575_v0 }
  0xa6   : > { %5902 = vmatpush3.bf16.msra.mxu0 %v6709_v2  ;;  %5926 = vmatpush3.bf16.msra.mxu1 %v6709_v2 }
  0xa7   : > { %5915 = vmatprep.subr.bf16.mxu0 %v6575_v0  ;;  %5939 = vmatprep.subr.bf16.mxu1 %v6575_v0 }
  0xa8   : > { %v732_v41 = vpop.trf.xlu0 }
  0xa9   : > { %5904 = vmatmul.mubr.msk.bf16.vlgmr.msra.gmra.mxu0 %vm406_vm1, %v732_v41  ;;  %5928 = vmatmul.mubr.msk.bf16.vlgmr.msra.gmra.mxu1 %vm406_vm1, %v978_v40  ;;  %v1145_v42 = vpop.trf.xlu1 }
  0xaa   : > { %5916 = vmatpush3.bf16.msra.mxu0 %v6700_v1  ;;  %5940 = vmatpush3.bf16.msra.mxu1 %v6700_v1 }
  0xab   : > { %5917 = vmatprep.subr.bf16.mxu0 %v6575_v0  ;;  %5941 = vmatprep.subr.bf16.mxu1 %v6575_v0 }
  0xac   : > { %5919 = vmatprep.mubr.msk.bf16.mxu0 %vm6576_vm0, %v6575_v0  ;;  %5943 = vmatprep.mubr.msk.bf16.mxu1 %vm6576_vm0, %v6575_v0 }
  0xae   : > { %5918 = vmatpush3.bf16.msra.mxu0 %v6709_v2  ;;  %5942 = vmatpush3.bf16.msra.mxu1 %v6709_v2 }
  0xaf   : > { %5931 = vmatprep.subr.bf16.mxu0 %v6575_v0  ;;  %5955 = vmatprep.subr.bf16.mxu1 %v6575_v0 }
  0xb0   : > { %v899_v43 = vpop.trf.xlu0 }
  0xb1   : > { %5920 = vmatmul.mubr.msk.bf16.vlgmr.msra.gmra.mxu0 %vm406_vm1, %v899_v43  ;;  %5944 = vmatmul.mubr.msk.bf16.vlgmr.msra.gmra.mxu1 %vm406_vm1, %v1145_v42  ;;  %v1312_v44 = vpop.trf.xlu1 }
  0xb2   : > { %5932 = vmatpush3.bf16.msra.mxu0 %v6700_v1  ;;  %5956 = vmatpush3.bf16.msra.mxu1 %v6700_v1 }
  0xb3   : > { %5933 = vmatprep.subr.bf16.mxu0 %v6575_v0  ;;  %5957 = vmatprep.subr.bf16.mxu1 %v6575_v0 }
  0xb4   : > { %5935 = vmatprep.mubr.msk.bf16.mxu0 %vm6576_vm0, %v6575_v0  ;;  %5959 = vmatprep.mubr.msk.bf16.mxu1 %vm6576_vm0, %v6575_v0 }
  0xb6   : > { %5934 = vmatpush3.bf16.msra.mxu0 %v6709_v2  ;;  %5958 = vmatpush3.bf16.msra.mxu1 %v6709_v2 }
  0xb7   : > { %5947 = vmatprep.subr.bf16.mxu0 %v6575_v0  ;;  %5971 = vmatprep.subr.bf16.mxu1 %v6575_v0 }
  0xb8   : > { %v1066_v45 = vpop.trf.xlu0 }
  0xb9   : > { %5936 = vmatmul.mubr.msk.bf16.vlgmr.msra.gmra.mxu0 %vm406_vm1, %v1066_v45  ;;  %5960 = vmatmul.mubr.msk.bf16.vlgmr.msra.gmra.mxu1 %vm406_vm1, %v1312_v44  ;;  %v1479_v46 = vpop.trf.xlu1 }
  0xba   : > { %5948 = vmatpush3.bf16.msra.mxu0 %v6700_v1  ;;  %5972 = vmatpush3.bf16.msra.mxu1 %v6700_v1 }
  0xbb   : > { %5949 = vmatprep.subr.bf16.mxu0 %v6575_v0  ;;  %5973 = vmatprep.subr.bf16.mxu1 %v6575_v0 }
  0xbc   : > { %5951 = vmatprep.mubr.msk.bf16.mxu0 %vm6576_vm0, %v6575_v0  ;;  %5975 = vmatprep.mubr.msk.bf16.mxu1 %vm6576_vm0, %v6575_v0 }
  0xbe   : > { %5950 = vmatpush3.bf16.msra.mxu0 %v6709_v2  ;;  %5974 = vmatpush3.bf16.msra.mxu1 %v6709_v2 }
  0xbf   : > { %5963 = vmatprep.subr.bf16.mxu0 %v6575_v0  ;;  %5987 = vmatprep.subr.bf16.mxu1 %v6575_v0 }
  0xc0   : > { %v1233_v47 = vpop.trf.xlu0 }
  0xc1   : > { %5952 = vmatmul.mubr.msk.bf16.vlgmr.msra.gmra.mxu0 %vm406_vm1, %v1233_v47  ;;  %5976 = vmatmul.mubr.msk.bf16.vlgmr.msra.gmra.mxu1 %vm406_vm1, %v1479_v46  ;;  %v1646_v48 = vpop.trf.xlu1 }
  0xc2   : > { %5964 = vmatpush3.bf16.msra.mxu0 %v6700_v1  ;;  %5988 = vmatpush3.bf16.msra.mxu1 %v6700_v1 }
  0xc3   : > { %5965 = vmatprep.subr.bf16.mxu0 %v6575_v0  ;;  %5989 = vmatprep.subr.bf16.mxu1 %v6575_v0 }
  0xc4   : > { %5967 = vmatprep.mubr.msk.bf16.mxu0 %vm6576_vm0, %v6575_v0  ;;  %5991 = vmatprep.mubr.msk.bf16.mxu1 %vm6576_vm0, %v6575_v0 }
  0xc6   : > { %5966 = vmatpush3.bf16.msra.mxu0 %v6709_v2  ;;  %5990 = vmatpush3.bf16.msra.mxu1 %v6709_v2 }
  0xc7   : > { %5979 = vmatprep.subr.bf16.mxu0 %v6575_v0  ;;  %6001 = vmatprep.subr.bf16.mxu1 %v6575_v0 }
  0xc8   : > { %v1400_v49 = vpop.trf.xlu0 }
  0xc9   : > { %5968 = vmatmul.mubr.msk.bf16.vlgmr.msra.gmra.mxu0 %vm406_vm1, %v1400_v49  ;;  %5992 = vmatmul.mubr.msk.bf16.vlgmr.msra.gmra.mxu1 %vm406_vm1, %v1646_v48  ;;  %v1567_v50 = vpop.trf.xlu1 }
  0xca   : > { %5980 = vmatpush3.bf16.msra.mxu0 %v6700_v1  ;;  %5983 = vmatprep.mubr.msk.bf16.mxu0 %vm6576_vm0, %v6575_v0 }
  0xcb   : > { %5981 = vmatprep.subr.bf16.mxu0 %v6575_v0  ;;  %6003 = vmatprep.mubr.msk.bf16.mxu1 %vm6576_vm0, %v6575_v0 }
  0xce   : > { %5982 = vmatpush3.bf16.msra.mxu0 %v6709_v2 }
  0xcf   : > { %5995 = vmatprep.subr.bf16.mxu0 %v6575_v0 }
  0xd1   : > { %5984 = vmatmul.mubr.msk.bf16.vlgmr.msra.gmra.mxu0 %vm406_vm1, %v1567_v50 }
  0xd2   : > { %5997 = vmatprep.mubr.msk.bf16.mxu0 %vm6576_vm0, %v6575_v0 }
 0x151   : > { %v522_v51 = vpop.f32.mrf.mxu1 }
 0x152   : > { %v5659_v52 = vpack.c.bf16 %v522_v51, %v522_v51 }
 0x153   : > { %v5881_v53 = vpop.f32.mrf.mxu1 }
 0x154   : > { %537 = vst.msk [vmem:[#allocation3] sm:$0xf] %vm451_vm2, %v5659_v52 }
 0x155   : > { %v525_v54 = vpop.f32.mrf.mxu1 }
 0x156   : > { %v5660_v55 = vpack.c.bf16 %v525_v54, %v525_v54 }
 0x157   : > { %v5882_v56 = vpop.f32.mrf.mxu1 }
 0x158   : > { %539 = vst.msk [vmem:[#allocation3 + $0x4] sm:$0x3] %vm538_vm3, %v5660_v55 }
 0x159   : > { %v444_v57 = vpop.f32.mrf.mxu0  ;;  %v689_v58 = vpop.f32.mrf.mxu1 }
 0x15a   : > { %v450_v59 = vpack.c.bf16 %v444_v57, %v444_v57  ;;  %v5661_v60 = vpack.c.bf16 %v689_v58, %v689_v58 }
 0x15b   : > { %v5873_v61 = vpop.f32.mrf.mxu0  ;;  %v5897_v62 = vpop.f32.mrf.mxu1 }
 0x15c   : > { %452 = vst.msk [vmem:[#allocation2] sm:$0xf] %vm451_vm2, %v450_v59  ;;  %705 = vst.msk [vmem:[#allocation3 + $0x8] sm:$0xf] %vm451_vm2, %v5661_v60 }
 0x15d   : > { %v447_v63 = vpop.f32.mrf.mxu0  ;;  %v692_v1 = vpop.f32.mrf.mxu1 }
 0x15e   : > { %v5662_v2 = vpack.c.bf16 %v692_v1, %v692_v1 }
 0x15f   : > { %v5874_v3 = vpop.f32.mrf.mxu0  ;;  %v5898_v4 = vpop.f32.mrf.mxu1  ;;  %v6873_v5 = vld [vmem:[#allocation3] sm:$0x3f]  }
 0x160   : > { %706 = vst.msk [vmem:[#allocation3 + $0xc] sm:$0x3] %vm538_vm3, %v5662_v2  ;;  %2173 = vrot.lane.b32.xlu0 %v6873_v5, %s6577_s17  ;;  %v1743_v8 = vsel %vm1738_vm4, %v6873_v5, 0 }
 0x161   : > { %v610_v6 = vpop.f32.mrf.mxu0  ;;  %v856_v7 = vpop.f32.mrf.mxu1  ;;  %5996 = vmatpush3.bf16.xpose.msra.mxu0 %v1743_v8 }
 0x162   : > { %v616_v9 = vpack.c.bf16 %v610_v6, %v610_v6  ;;  %v5663_v10 = vpack.c.bf16 %v856_v7, %v856_v7  ;;  %6007 = vmatprep.subr.bf16.mxu0 %v6575_v0 }
 0x163   : > { %v5889_v11 = vpop.f32.mrf.mxu0  ;;  %v5913_v12 = vpop.f32.mrf.mxu1  ;;  %v1709_v13 = vld [vmem:[#allocation2] sm:$0xf] }
 0x164   : > { %618 = vst.msk [vmem:[#allocation2 + $0x4] sm:$0xf] %vm451_vm2, %v616_v9  ;;  %872 = vst.msk [vmem:[#allocation3 + $0x10] sm:$0xf] %vm451_vm2, %v5663_v10  ;;  %v6883_v14 = vcombine.low %v1709_v13, %v1709_v13 }
 0x165   : > { %v613_v15 = vpop.f32.mrf.mxu0  ;;  %v859_v16 = vpop.f32.mrf.mxu1 }
 0x166   : > { %v5664_v17 = vpack.c.bf16 %v859_v16, %v859_v16  ;;  %2171 = vrot.lane.b32.xlu1 %v6883_v14, %s6577_s17 }
 0x167   : > { %v5890_v18 = vpop.f32.mrf.mxu0  ;;  %v5914_v19 = vpop.f32.mrf.mxu1  ;;  %v6887_v20 = vld [vmem:[#allocation3 + $0x8] sm:$0x3f]  }
 0x168   : > { %873 = vst.msk [vmem:[#allocation3 + $0x14] sm:$0x3] %vm538_vm3, %v5664_v17  ;;  %5998 = vmatmul.mubr.msk.bf16.vlgmr.msra.gmra.mxu0 %vm1738_vm4, %v1709_v13  ;;  %v1794_v23 = vsel %vm1738_vm4, %v6887_v20, 0 }
 0x169   : > { %v777_v21 = vpop.f32.mrf.mxu0  ;;  %v1023_v22 = vpop.f32.mrf.mxu1  ;;  %6002 = vmatpush3.bf16.xpose.msra.mxu1 %v1794_v23  ;;  %6009 = vmatprep.mubr.msk.bf16.mxu0 %vm6576_vm0, %v6575_v0 }
 0x16a   : > { %v783_v24 = vpack.c.bf16 %v777_v21, %v777_v21  ;;  %v5665_v25 = vpack.c.bf16 %v1023_v22, %v1023_v22  ;;  %2226 = vrot.lane.b32.xlu1 %v6887_v20, %s6577_s17  ;;  %6013 = vmatprep.subr.bf16.mxu1 %v6575_v0 }
 0x16b   : > { %v5905_v26 = vpop.f32.mrf.mxu0  ;;  %v5929_v27 = vpop.f32.mrf.mxu1  ;;  %v1710_v28 = vld [vmem:[#allocation2 + $0x4] sm:$0xf] }
 0x16c   : > { %785 = vst.msk [vmem:[#allocation2 + $0x8] sm:$0xf] %vm451_vm2, %v783_v24  ;;  %1039 = vst.msk [vmem:[#allocation3 + $0x18] sm:$0xf] %vm451_vm2, %v5665_v25  ;;  %v6900_v29 = vcombine.low %v1710_v28, %v1710_v28 }
 0x16d   : > { %v780_v30 = vpop.f32.mrf.mxu0  ;;  %v1026_v31 = vpop.f32.mrf.mxu1 }
 0x16e   : > { %v5666_v32 = vpack.c.bf16 %v1026_v31, %v1026_v31  ;;  %2224 = vrot.lane.b32.xlu0 %v6900_v29, %s6577_s17 }
 0x16f   : > { %v5906_v33 = vpop.f32.mrf.mxu0  ;;  %v5930_v34 = vpop.f32.mrf.mxu1  ;;  %v6904_v35 = vld [vmem:[#allocation3 + $0x10] sm:$0x3f]  }
 0x170   : > { %1040 = vst.msk [vmem:[#allocation3 + $0x1c] sm:$0x3] %vm538_vm3, %v5666_v32  ;;  %2279 = vrot.lane.b32.xlu1 %v6904_v35, %s6577_s17  ;;  %6004 = vmatmul.mubr.msk.bf16.vlgmr.msra.gmra.mxu1 %vm1738_vm4, %v1710_v28  ;;  %v1845_v38 = vsel %vm1738_vm4, %v6904_v35, 0 }
 0x171   : > { %v944_v36 = vpop.f32.mrf.mxu0  ;;  %v1190_v37 = vpop.f32.mrf.mxu1  ;;  %6008 = vmatpush3.bf16.xpose.msra.mxu0 %v1845_v38  ;;  %6015 = vmatprep.mubr.msk.bf16.mxu1 %vm6576_vm0, %v6575_v0 }
 0x172   : > { %v950_v39 = vpack.c.bf16 %v944_v36, %v944_v36  ;;  %v5667_v40 = vpack.c.bf16 %v1190_v37, %v1190_v37  ;;  %6019 = vmatprep.subr.bf16.mxu0 %v6575_v0 }
 0x173   : > { %v5921_v41 = vpop.f32.mrf.mxu0  ;;  %v5945_v42 = vpop.f32.mrf.mxu1  ;;  %v1711_v43 = vld [vmem:[#allocation2 + $0x8] sm:$0xf] }
 0x174   : > { %952 = vst.msk [vmem:[#allocation2 + $0xc] sm:$0xf] %vm451_vm2, %v950_v39  ;;  %1206 = vst.msk [vmem:[#allocation3 + $0x20] sm:$0xf] %vm451_vm2, %v5667_v40  ;;  %v6917_v44 = vcombine.low %v1711_v43, %v1711_v43 }
 0x175   : > { %v947_v45 = vpop.f32.mrf.mxu0  ;;  %v1193_v46 = vpop.f32.mrf.mxu1 }
 0x176   : > { %v5668_v47 = vpack.c.bf16 %v1193_v46, %v1193_v46  ;;  %2277 = vrot.lane.b32.xlu0 %v6917_v44, %s6577_s17 }
 0x177   : > { %v5922_v48 = vpop.f32.mrf.mxu0  ;;  %v5946_v49 = vpop.f32.mrf.mxu1  ;;  %v6921_v50 = vld [vmem:[#allocation3 + $0x18] sm:$0x3f]  }
 0x178   : > { %1207 = vst.msk [vmem:[#allocation3 + $0x24] sm:$0x3] %vm538_vm3, %v5668_v47  ;;  %2332 = vrot.lane.b32.xlu1 %v6921_v50, %s6577_s17  ;;  %6010 = vmatmul.mubr.msk.bf16.vlgmr.msra.gmra.mxu0 %vm1738_vm4, %v1711_v43  ;;  %v1896_v53 = vsel %vm1738_vm4, %v6921_v50, 0 }
 0x179   : > { %v1111_v51 = vpop.f32.mrf.mxu0  ;;  %v1357_v52 = vpop.f32.mrf.mxu1  ;;  %6014 = vmatpush3.bf16.xpose.msra.mxu1 %v1896_v53  ;;  %6021 = vmatprep.mubr.msk.bf16.mxu0 %vm6576_vm0, %v6575_v0 }
 0x17a   : > { %v1117_v54 = vpack.c.bf16 %v1111_v51, %v1111_v51  ;;  %v5669_v55 = vpack.c.bf16 %v1357_v52, %v1357_v52  ;;  %6025 = vmatprep.subr.bf16.mxu1 %v6575_v0 }
 0x17b   : > { %v5937_v56 = vpop.f32.mrf.mxu0  ;;  %v5961_v57 = vpop.f32.mrf.mxu1  ;;  %v1712_v58 = vld [vmem:[#allocation2 + $0xc] sm:$0xf] }
 0x17c   : > { %1119 = vst.msk [vmem:[#allocation2 + $0x10] sm:$0xf] %vm451_vm2, %v1117_v54  ;;  %1373 = vst.msk [vmem:[#allocation3 + $0x28] sm:$0xf] %vm451_vm2, %v5669_v55  ;;  %v6934_v59 = vcombine.low %v1712_v58, %v1712_v58 }
 0x17d   : > { %v1114_v60 = vpop.f32.mrf.mxu0  ;;  %v1360_v61 = vpop.f32.mrf.mxu1 }
 0x17e   : > { %v5670_v62 = vpack.c.bf16 %v1360_v61, %v1360_v61  ;;  %2330 = vrot.lane.b32.xlu0 %v6934_v59, %s6577_s17 }
 0x17f   : > { %v5938_v63 = vpop.f32.mrf.mxu0  ;;  %v5962_v1 = vpop.f32.mrf.mxu1  ;;  %v6938_v2 = vld [vmem:[#allocation3 + $0x20] sm:$0x3f]  }
 0x180   : > { %1374 = vst.msk [vmem:[#allocation3 + $0x2c] sm:$0x3] %vm538_vm3, %v5670_v62  ;;  %2385 = vrot.lane.b32.xlu1 %v6938_v2, %s6577_s17  ;;  %6016 = vmatmul.mubr.msk.bf16.vlgmr.msra.gmra.mxu1 %vm1738_vm4, %v1712_v58  ;;  %v1947_v6 = vsel %vm1738_vm4, %v6938_v2, 0 }
 0x181   : > { %v1278_v3 = vpop.f32.mrf.mxu0  ;;  %v1524_v4 = vpop.f32.mrf.mxu1  ;;  %6020 = vmatpush3.bf16.xpose.msra.mxu0 %v1947_v6  ;;  %6027 = vmatprep.mubr.msk.bf16.mxu1 %vm6576_vm0, %v6575_v0 }
 0x182   : > { %v1284_v7 = vpack.c.bf16 %v1278_v3, %v1278_v3  ;;  %v5671_v8 = vpack.c.bf16 %v1524_v4, %v1524_v4  ;;  %6031 = vmatprep.subr.bf16.mxu0 %v6575_v0 }
 0x183   : > { %v5953_v9 = vpop.f32.mrf.mxu0  ;;  %v5977_v10 = vpop.f32.mrf.mxu1  ;;  %v1713_v11 = vld [vmem:[#allocation2 + $0x10] sm:$0xf] }
 0x184   : > { %1286 = vst.msk [vmem:[#allocation2 + $0x14] sm:$0xf] %vm451_vm2, %v1284_v7  ;;  %1540 = vst.msk [vmem:[#allocation3 + $0x30] sm:$0xf] %vm451_vm2, %v5671_v8  ;;  %v6951_v12 = vcombine.low %v1713_v11, %v1713_v11 }
 0x185   : > { %v1281_v13 = vpop.f32.mrf.mxu0  ;;  %v1527_v15 = vpop.f32.mrf.mxu1 }
 0x186   : > { %v5672_v16 = vpack.c.bf16 %v1527_v15, %v1527_v15  ;;  %2383 = vrot.lane.b32.xlu0 %v6951_v12, %s6577_s17 }
 0x187   : > { %v5954_v17 = vpop.f32.mrf.mxu0  ;;  %v5978_v18 = vpop.f32.mrf.mxu1  ;;  %v6955_v19 = vld [vmem:[#allocation3 + $0x28] sm:$0x3f]  }
 0x188   : > { %1541 = vst.msk [vmem:[#allocation3 + $0x34] sm:$0x3] %vm538_vm3, %v5672_v16  ;;  %2438 = vrot.lane.b32.xlu1 %v6955_v19, %s6577_s17  ;;  %6022 = vmatmul.mubr.msk.bf16.vlgmr.msra.gmra.mxu0 %vm1738_vm4, %v1713_v11  ;;  %v1998_v23 = vsel %vm1738_vm4, %v6955_v19, 0 }
 0x189   : > { %v1445_v21 = vpop.f32.mrf.mxu0  ;;  %v1691_v22 = vpop.f32.mrf.mxu1  ;;  %6026 = vmatpush3.bf16.xpose.msra.mxu1 %v1998_v23  ;;  %6033 = vmatprep.mubr.msk.bf16.mxu0 %vm6576_vm0, %v6575_v0 }
 0x18a   : > { %v1451_v24 = vpack.c.bf16 %v1445_v21, %v1445_v21  ;;  %v5673_v25 = vpack.c.bf16 %v1691_v22, %v1691_v22  ;;  %6037 = vmatprep.subr.bf16.mxu1 %v6575_v0 }
 0x18b   : > { %v5969_v26 = vpop.f32.mrf.mxu0  ;;  %v5993_v27 = vpop.f32.mrf.mxu1  ;;  %v1714_v28 = vld [vmem:[#allocation2 + $0x14] sm:$0xf] }
 0x18c   : > { %1453 = vst.msk [vmem:[#allocation2 + $0x18] sm:$0xf] %vm451_vm2, %v1451_v24  ;;  %1707 = vst.msk [vmem:[#allocation3 + $0x38] sm:$0xf] %vm451_vm2, %v5673_v25  ;;  %v6968_v30 = vcombine.low %v1714_v28, %v1714_v28 }
 0x18d   : > { %v1448_v31 = vpop.f32.mrf.mxu0  ;;  %v1694_v32 = vpop.f32.mrf.mxu1 }
 0x18e   : > { %v5674_v33 = vpack.c.bf16 %v1694_v32, %v1694_v32  ;;  %2436 = vrot.lane.b32.xlu0 %v6968_v30, %s6577_s17 }
 0x18f   : > { %v5970_v34 = vpop.f32.mrf.mxu0  ;;  %v5994_v36 = vpop.f32.mrf.mxu1  ;;  %v6972_v37 = vld [vmem:[#allocation3 + $0x30] sm:$0x3f]  }
 0x190   : > { %1708 = vst.msk [vmem:[#allocation3 + $0x3c] sm:$0x3] %vm538_vm3, %v5674_v33  ;;  %2491 = vrot.lane.b32.xlu1 %v6972_v37, %s6577_s17  ;;  %6028 = vmatmul.mubr.msk.bf16.vlgmr.msra.gmra.mxu1 %vm1738_vm4, %v1714_v28  ;;  %v2049_v39 = vsel %vm1738_vm4, %v6972_v37, 0 }
 0x191   : > { %v1612_v38 = vpop.f32.mrf.mxu0  ;;  %6032 = vmatpush3.bf16.xpose.msra.mxu0 %v2049_v39  ;;  %6039 = vmatprep.mubr.msk.bf16.mxu1 %vm6576_vm0, %v6575_v0 }
 0x192   : > { %v1618_v40 = vpack.c.bf16 %v1612_v38, %v1612_v38  ;;  %6043 = vmatprep.subr.bf16.mxu0 %v6575_v0 }
 0x193   : > { %v5985_v41 = vpop.f32.mrf.mxu0  ;;  %v1715_v42 = vld [vmem:[#allocation2 + $0x18] sm:$0xf] }
 0x194   : > { %1620 = vst.msk [vmem:[#allocation2 + $0x1c] sm:$0xf] %vm451_vm2, %v1618_v40  ;;  %v6984_v43 = vcombine.low %v1715_v42, %v1715_v42 }
 0x195   : > { %v1615_v45 = vpop.f32.mrf.mxu0 }
 0x196   : > { %2489 = vrot.lane.b32.xlu0 %v6984_v43, %s6577_s17 }
 0x197   : > { %v5986_v46 = vpop.f32.mrf.mxu0  ;;  %v6988_v47 = vld [vmem:[#allocation3 + $0x38] sm:$0x3f]  }
 0x198   : > { %2544 = vrot.lane.b32.xlu1 %v6988_v47, %s6577_s17  ;;  %6034 = vmatmul.mubr.msk.bf16.vlgmr.msra.gmra.mxu0 %vm1738_vm4, %v1715_v42  ;;  %v2100_v48 = vsel %vm1738_vm4, %v6988_v47, 0 }
 0x199   : > { %6038 = vmatpush3.bf16.xpose.msra.mxu1 %v2100_v48  ;;  %6045 = vmatprep.mubr.msk.bf16.mxu0 %vm6576_vm0, %v6575_v0 }
 0x19a   : > { %6049 = vmatprep.subr.bf16.mxu1 %v6575_v0 }
 0x19b   : > { %v1716_v49 = vld [vmem:[#allocation2 + $0x1c] sm:$0xf] }
 0x19c   : > { %v6998_v51 = vcombine.low %v1716_v49, %v1716_v49  ;;  %2620 = vrot.lane.b32.xlu1 %v6873_v5, %s6578_s18 }
 0x19e   : > { %2542 = vrot.lane.b32.xlu0 %v6998_v51, %s6577_s17  ;;  %s5443_s17 = sshll.u32 %s7680_s20, 1 }
 0x19f   : > { %s355_s20 = scalar_select %p354_p9, %s6650_s6, 1 }
 0x1a0   : > { %2670 = vrot.lane.b32.xlu1 %v6887_v20, %s6578_s18  ;;  %6040 = vmatmul.mubr.msk.bf16.vlgmr.msra.gmra.mxu1 %vm1738_vm4, %v1716_v49 }
 0x1a1   : > { %6051 = vmatprep.mubr.msk.bf16.mxu1 %vm6576_vm0, %v6575_v0 }
 0x1a2   : > { %2618 = vrot.lane.b32.xlu0 %v6883_v14, %s6578_s18 }
 0x1a4   : > { %2720 = vrot.lane.b32.xlu1 %v6904_v35, %s6578_s18 }
 0x1a6   : > { %2668 = vrot.lane.b32.xlu0 %v6900_v29, %s6578_s18 }
 0x1a8   : > { %2770 = vrot.lane.b32.xlu1 %v6921_v50, %s6578_s18 }
 0x1aa   : > { %2718 = vrot.lane.b32.xlu0 %v6917_v44, %s6578_s18 }
 0x1ac   : > { %2820 = vrot.lane.b32.xlu1 %v6938_v2, %s6578_s18 }
 0x1ae   : > { %2768 = vrot.lane.b32.xlu0 %v6934_v59, %s6578_s18 }
 0x1b0   : > { %2870 = vrot.lane.b32.xlu1 %v6955_v19, %s6578_s18 }
 0x1b2   : > { %2818 = vrot.lane.b32.xlu0 %v6951_v12, %s6578_s18 }
 0x1b4   : > { %2920 = vrot.lane.b32.xlu1 %v6972_v37, %s6578_s18 }
 0x1b6   : > { %2868 = vrot.lane.b32.xlu0 %v6968_v30, %s6578_s18 }
 0x1b8   : > { %2970 = vrot.lane.b32.xlu1 %v6988_v47, %s6578_s18 }
 0x1ba   : > { %2918 = vrot.lane.b32.xlu0 %v6984_v43, %s6578_s18 }
 0x1bc   : > { %3046 = vrot.lane.b32.xlu1 %v6873_v5, %s6579_s19 }
 0x1be   : > { %2968 = vrot.lane.b32.xlu0 %v6998_v51, %s6578_s18  ;;  %s5652_s18 = sld [smem:[#allocation5 + $0x7]] }
 0x1c0   : > { %3096 = vrot.lane.b32.xlu1 %v6887_v20, %s6579_s19 }
 0x1c2   : > { %3044 = vrot.lane.b32.xlu0 %v6883_v14, %s6579_s19 }
 0x1c4   : > { %3146 = vrot.lane.b32.xlu1 %v6904_v35, %s6579_s19 }
 0x1c6   : > { %3094 = vrot.lane.b32.xlu0 %v6900_v29, %s6579_s19 }
 0x1c8   : > { %3196 = vrot.lane.b32.xlu1 %v6921_v50, %s6579_s19 }
 0x1ca   : > { %3144 = vrot.lane.b32.xlu0 %v6917_v44, %s6579_s19 }
 0x1cc   : > { %3246 = vrot.lane.b32.xlu1 %v6938_v2, %s6579_s19 }
 0x1ce   : > { %3194 = vrot.lane.b32.xlu0 %v6934_v59, %s6579_s19 }
 0x1d0   : > { %3296 = vrot.lane.b32.xlu1 %v6955_v19, %s6579_s19 }
 0x1d2   : > { %3244 = vrot.lane.b32.xlu0 %v6951_v12, %s6579_s19  ;;  %v2174_v52 = vpop.permute.xlu0 %2173 }
 0x1d3   : > { %v2179_v53 = vsel %vm1738_vm4, %v2174_v52, 0 }
 0x1d4   : > { %3346 = vrot.lane.b32.xlu1 %v6972_v37, %s6579_s19  ;;  %6044 = vmatpush3.bf16.xpose.msra.mxu0 %v2179_v53 }
 0x1d5   : > { %6055 = vmatprep.subr.bf16.mxu0 %v6575_v0 }
 0x1d6   : > { %3294 = vrot.lane.b32.xlu0 %v6968_v30, %s6579_s19 }
 0x1d8   : > { %v2172_v54 = vpop.permute.xlu1 %2171  ;;  %3396 = vrot.lane.b32.xlu1 %v6988_v47, %s6579_s19 }
 0x1da   : > { %3344 = vrot.lane.b32.xlu0 %v6984_v43, %s6579_s19 }
 0x1db   : > { %6046 = vmatmul.mubr.msk.bf16.vlgmr.msra.gmra.mxu0 %vm1738_vm4, %v2172_v54 }
 0x1dc   : > { %v2227_v55 = vpop.permute.xlu1 %2226  ;;  %3472 = vrot.lane.b32.xlu1 %v6873_v5, %s6580_s21  ;;  %6057 = vmatprep.mubr.msk.bf16.mxu0 %vm6576_vm0, %v6575_v0 }
 0x1dd   : > { %v2232_v56 = vsel %vm1738_vm4, %v2227_v55, 0 }
 0x1de   : > { %3394 = vrot.lane.b32.xlu0 %v6998_v51, %s6579_s19  ;;  %6050 = vmatpush3.bf16.xpose.msra.mxu1 %v2232_v56 }
 0x1df   : > { %6061 = vmatprep.subr.bf16.mxu1 %v6575_v0 }
 0x1e0   : > { %3522 = vrot.lane.b32.xlu1 %v6887_v20, %s6580_s21  ;;  %v2225_v57 = vpop.permute.xlu0 %2224 }
 0x1e2   : > { %3470 = vrot.lane.b32.xlu0 %v6883_v14, %s6580_s21  ;;  %v2280_v58 = vpop.permute.xlu1 %2279 }
 0x1e3   : > { %v2285_v60 = vsel %vm1738_vm4, %v2280_v58, 0 }
 0x1e4   : > { %3572 = vrot.lane.b32.xlu1 %v6904_v35, %s6580_s21  ;;  %6056 = vmatpush3.bf16.xpose.msra.mxu0 %v2285_v60 }
 0x1e5   : > { %6052 = vmatmul.mubr.msk.bf16.vlgmr.msra.gmra.mxu1 %vm1738_vm4, %v2225_v57  ;;  %6067 = vmatprep.subr.bf16.mxu0 %v6575_v0 }
 0x1e6   : > { %3520 = vrot.lane.b32.xlu0 %v6900_v29, %s6580_s21  ;;  %6063 = vmatprep.mubr.msk.bf16.mxu1 %vm6576_vm0, %v6575_v0 }
 0x1e8   : > { %3622 = vrot.lane.b32.xlu1 %v6921_v50, %s6580_s21  ;;  %v2278_v61 = vpop.permute.xlu0 %2277 }
 0x1ea   : > { %3570 = vrot.lane.b32.xlu0 %v6917_v44, %s6580_s21  ;;  %v2333_v62 = vpop.permute.xlu1 %2332 }
 0x1eb   : > { %v2338_v63 = vsel %vm1738_vm4, %v2333_v62, 0  ;;  %6058 = vmatmul.mubr.msk.bf16.vlgmr.msra.gmra.mxu0 %vm1738_vm4, %v2278_v61 }
 0x1ec   : > { %3672 = vrot.lane.b32.xlu1 %v6938_v2, %s6580_s21  ;;  %6062 = vmatpush3.bf16.xpose.msra.mxu1 %v2338_v63 }
 0x1ed   : > { %6069 = vmatprep.mubr.msk.bf16.mxu0 %vm6576_vm0, %v6575_v0  ;;  %6073 = vmatprep.subr.bf16.mxu1 %v6575_v0 }
 0x1ee   : > { %3620 = vrot.lane.b32.xlu0 %v6934_v59, %s6580_s21 }
 0x1f0   : > { %3722 = vrot.lane.b32.xlu1 %v6955_v19, %s6580_s21  ;;  %v2331_v1 = vpop.permute.xlu0 %2330 }
 0x1f2   : > { %3670 = vrot.lane.b32.xlu0 %v6951_v12, %s6580_s21  ;;  %v2386_v3 = vpop.permute.xlu1 %2385 }
 0x1f3   : > { %v2391_v4 = vsel %vm1738_vm4, %v2386_v3, 0  ;;  %6064 = vmatmul.mubr.msk.bf16.vlgmr.msra.gmra.mxu1 %vm1738_vm4, %v2331_v1 }
 0x1f4   : > { %3772 = vrot.lane.b32.xlu1 %v6972_v37, %s6580_s21  ;;  %6068 = vmatpush3.bf16.xpose.msra.mxu0 %v2391_v4 }
 0x1f5   : > { %6075 = vmatprep.mubr.msk.bf16.mxu1 %vm6576_vm0, %v6575_v0  ;;  %6079 = vmatprep.subr.bf16.mxu0 %v6575_v0 }
 0x1f6   : > { %3720 = vrot.lane.b32.xlu0 %v6968_v30, %s6580_s21 }
 0x1f8   : > { %3822 = vrot.lane.b32.xlu1 %v6988_v47, %s6580_s21  ;;  %v2384_v6 = vpop.permute.xlu0 %2383 }
 0x1fa   : > { %3770 = vrot.lane.b32.xlu0 %v6984_v43, %s6580_s21  ;;  %v2439_v7 = vpop.permute.xlu1 %2438 }
 0x1fb   : > { %v2444_v8 = vsel %vm1738_vm4, %v2439_v7, 0  ;;  %6070 = vmatmul.mubr.msk.bf16.vlgmr.msra.gmra.mxu0 %vm1738_vm4, %v2384_v6 }
 0x1fc   : > { %3898 = vrot.lane.b32.xlu1 %v6873_v5, %s6581_s22  ;;  %6074 = vmatpush3.bf16.xpose.msra.mxu1 %v2444_v8 }
 0x1fd   : > { %6081 = vmatprep.mubr.msk.bf16.mxu0 %vm6576_vm0, %v6575_v0  ;;  %6085 = vmatprep.subr.bf16.mxu1 %v6575_v0 }
 0x1fe   : > { %3820 = vrot.lane.b32.xlu0 %v6998_v51, %s6580_s21 }
 0x200   : > { %3948 = vrot.lane.b32.xlu1 %v6887_v20, %s6581_s22  ;;  %v2437_v9 = vpop.permute.xlu0 %2436 }
 0x202   : > { %3896 = vrot.lane.b32.xlu0 %v6883_v14, %s6581_s22  ;;  %v2492_v10 = vpop.permute.xlu1 %2491 }
 0x203   : > { %v2497_v11 = vsel %vm1738_vm4, %v2492_v10, 0  ;;  %6076 = vmatmul.mubr.msk.bf16.vlgmr.msra.gmra.mxu1 %vm1738_vm4, %v2437_v9 }
 0x204   : > { %3998 = vrot.lane.b32.xlu1 %v6904_v35, %s6581_s22  ;;  %6080 = vmatpush3.bf16.xpose.msra.mxu0 %v2497_v11 }
 0x205   : > { %6091 = vmatprep.subr.bf16.mxu0 %v6575_v0  ;;  %6087 = vmatprep.mubr.msk.bf16.mxu1 %vm6576_vm0, %v6575_v0 }
 0x206   : > { %3946 = vrot.lane.b32.xlu0 %v6900_v29, %s6581_s22 }
 0x208   : > { %4048 = vrot.lane.b32.xlu1 %v6921_v50, %s6581_s22  ;;  %v2490_v13 = vpop.permute.xlu0 %2489 }
 0x20a   : > { %3996 = vrot.lane.b32.xlu0 %v6917_v44, %s6581_s22  ;;  %v2545_v15 = vpop.permute.xlu1 %2544 }
 0x20b   : > { %v2550_v16 = vsel %vm1738_vm4, %v2545_v15, 0  ;;  %6082 = vmatmul.mubr.msk.bf16.vlgmr.msra.gmra.mxu0 %vm1738_vm4, %v2490_v13 }
 0x20c   : > { %4098 = vrot.lane.b32.xlu1 %v6938_v2, %s6581_s22  ;;  %6086 = vmatpush3.bf16.xpose.msra.mxu1 %v2550_v16 }
 0x20d   : > { %6097 = vmatprep.subr.bf16.mxu1 %v6575_v0  ;;  %6093 = vmatprep.mubr.msk.bf16.mxu0 %vm6576_vm0, %v6575_v0 }
 0x20e   : > { %4046 = vrot.lane.b32.xlu0 %v6934_v59, %s6581_s22  ;;  %v2621_v17 = vpop.permute.xlu1 %2620 }
 0x20f   : > { %v2626_v18 = vsel %vm1738_vm4, %v2621_v17, 0 }
 0x210   : > { %v2543_v21 = vpop.permute.xlu0 %2542  ;;  %4148 = vrot.lane.b32.xlu1 %v6955_v19, %s6581_s22  ;;  %6092 = vmatpush3.bf16.xpose.msra.mxu0 %v2626_v18 }
 0x211   : > { %6103 = vmatprep.subr.bf16.mxu0 %v6575_v0 }
 0x212   : > { %4096 = vrot.lane.b32.xlu0 %v6951_v12, %s6581_s22  ;;  %v2671_v22 = vpop.permute.xlu1 %2670 }
 0x213   : > { %v2676_v23 = vsel %vm1738_vm4, %v2671_v22, 0  ;;  %6088 = vmatmul.mubr.msk.bf16.vlgmr.msra.gmra.mxu1 %vm1738_vm4, %v2543_v21 }
 0x214   : > { %v2619_v24 = vpop.permute.xlu0 %2618  ;;  %4198 = vrot.lane.b32.xlu1 %v6972_v37, %s6581_s22  ;;  %6098 = vmatpush3.bf16.xpose.msra.mxu1 %v2676_v23 }
 0x215   : > { %6099 = vmatprep.mubr.msk.bf16.mxu1 %vm6576_vm0, %v6575_v0  ;;  %6109 = vmatprep.subr.bf16.mxu1 %v6575_v0 }
 0x216   : > { %4146 = vrot.lane.b32.xlu0 %v6968_v30, %s6581_s22  ;;  %v2721_v25 = vpop.permute.xlu1 %2720 }
 0x217   : > { %v2726_v26 = vsel %vm1738_vm4, %v2721_v25, 0  ;;  %6094 = vmatmul.mubr.msk.bf16.vlgmr.msra.gmra.mxu0 %vm1738_vm4, %v2619_v24 }
 0x218   : > { %v2669_v27 = vpop.permute.xlu0 %2668  ;;  %4248 = vrot.lane.b32.xlu1 %v6988_v47, %s6581_s22  ;;  %6104 = vmatpush3.bf16.xpose.msra.mxu0 %v2726_v26 }
 0x219   : > { %6105 = vmatprep.mubr.msk.bf16.mxu0 %vm6576_vm0, %v6575_v0  ;;  %6115 = vmatprep.subr.bf16.mxu0 %v6575_v0 }
 0x21a   : > { %4196 = vrot.lane.b32.xlu0 %v6984_v43, %s6581_s22  ;;  %v2771_v28 = vpop.permute.xlu1 %2770 }
 0x21b   : > { %v2776_v31 = vsel %vm1738_vm4, %v2771_v28, 0  ;;  %6100 = vmatmul.mubr.msk.bf16.vlgmr.msra.gmra.mxu1 %vm1738_vm4, %v2669_v27 }
 0x21c   : > { %v2719_v32 = vpop.permute.xlu0 %2718  ;;  %4324 = vrot.lane.b32.xlu1 %v6873_v5, %s6582_s23  ;;  %6110 = vmatpush3.bf16.xpose.msra.mxu1 %v2776_v31 }
 0x21d   : > { %6111 = vmatprep.mubr.msk.bf16.mxu1 %vm6576_vm0, %v6575_v0  ;;  %6121 = vmatprep.subr.bf16.mxu1 %v6575_v0 }
 0x21e   : > { %4246 = vrot.lane.b32.xlu0 %v6998_v51, %s6581_s22  ;;  %v2821_v33 = vpop.permute.xlu1 %2820  ;;  %s7548_s22 = scalar_lea.vmem %s7666_s2, %s5443_s17 }
 0x21f   : > { %v2826_v34 = vsel %vm1738_vm4, %v2821_v33, 0  ;;  %6106 = vmatmul.mubr.msk.bf16.vlgmr.msra.gmra.mxu0 %vm1738_vm4, %v2719_v32 }
 0x220   : > { %v2769_v36 = vpop.permute.xlu0 %2768  ;;  %4374 = vrot.lane.b32.xlu1 %v6887_v20, %s6582_s23  ;;  %6116 = vmatpush3.bf16.xpose.msra.mxu0 %v2826_v34 }
 0x221   : > { %6117 = vmatprep.mubr.msk.bf16.mxu0 %vm6576_vm0, %v6575_v0  ;;  %6127 = vmatprep.subr.bf16.mxu0 %v6575_v0 }
 0x222   : > { %4322 = vrot.lane.b32.xlu0 %v6883_v14, %s6582_s23  ;;  %v2871_v38 = vpop.permute.xlu1 %2870 }
 0x223   : > { %v2876_v39 = vsel %vm1738_vm4, %v2871_v38, 0  ;;  %6112 = vmatmul.mubr.msk.bf16.vlgmr.msra.gmra.mxu1 %vm1738_vm4, %v2769_v36 }
 0x224   : > { %v2819_v40 = vpop.permute.xlu0 %2818  ;;  %4424 = vrot.lane.b32.xlu1 %v6904_v35, %s6582_s23  ;;  %6122 = vmatpush3.bf16.xpose.msra.mxu1 %v2876_v39 }
 0x225   : > { %6123 = vmatprep.mubr.msk.bf16.mxu1 %vm6576_vm0, %v6575_v0  ;;  %6133 = vmatprep.subr.bf16.mxu1 %v6575_v0 }
 0x226   : > { %4372 = vrot.lane.b32.xlu0 %v6900_v29, %s6582_s23  ;;  %v2921_v41 = vpop.permute.xlu1 %2920 }
 0x227   : > { %v2926_v42 = vsel %vm1738_vm4, %v2921_v41, 0  ;;  %6118 = vmatmul.mubr.msk.bf16.vlgmr.msra.gmra.mxu0 %vm1738_vm4, %v2819_v40 }
 0x228   : > { %v2869_v45 = vpop.permute.xlu0 %2868  ;;  %4474 = vrot.lane.b32.xlu1 %v6921_v50, %s6582_s23  ;;  %v7179_v46 = vpop.f32.mrf.mxu0  ;;  %6128 = vmatpush3.bf16.xpose.msra.mxu0 %v2926_v42 }
 0x229   : > { %6129 = vmatprep.mubr.msk.bf16.mxu0 %vm6576_vm0, %v6575_v0  ;;  %6139 = vmatprep.subr.bf16.mxu0 %v6575_v0 }
 0x22a   : > { %4422 = vrot.lane.b32.xlu0 %v6917_v44, %s6582_s23  ;;  %v2971_v48 = vpop.permute.xlu1 %2970  ;;  %v5999_v49 = vpop.f32.mrf.mxu0 }
 0x22b   : > { %v2976_v52 = vsel %vm1738_vm4, %v2971_v48, 0  ;;  %6124 = vmatmul.mubr.msk.bf16.vlgmr.msra.gmra.mxu1 %vm1738_vm4, %v2869_v45 }
 0x22c   : > { %v2919_v53 = vpop.permute.xlu0 %2918  ;;  %4524 = vrot.lane.b32.xlu1 %v6938_v2, %s6582_s23  ;;  %v1782_v54 = vpop.f32.mrf.mxu0  ;;  %6134 = vmatpush3.bf16.xpose.msra.mxu1 %v2976_v52 }
 0x22d   : > { %6135 = vmatprep.mubr.msk.bf16.mxu1 %vm6576_vm0, %v6575_v0  ;;  %6145 = vmatprep.subr.bf16.mxu1 %v6575_v0 }
 0x22e   : > { %4472 = vrot.lane.b32.xlu0 %v6934_v59, %s6582_s23  ;;  %v3047_v55 = vpop.permute.xlu1 %3046  ;;  %v6000_v56 = vpop.f32.mrf.mxu0 }
 0x22f   : > { %v3052_v57 = vsel %vm1738_vm4, %v3047_v55, 0  ;;  %6130 = vmatmul.mubr.msk.bf16.vlgmr.msra.gmra.mxu0 %vm1738_vm4, %v2919_v53 }
 0x230   : > { %v2969_v58 = vpop.permute.xlu0 %2968  ;;  %4574 = vrot.lane.b32.xlu1 %v6955_v19, %s6582_s23  ;;  %v7199_v60 = vpop.f32.mrf.mxu1  ;;  %6140 = vmatpush3.bf16.xpose.msra.mxu0 %v3052_v57 }
 0x231   : > { %6141 = vmatprep.mubr.msk.bf16.mxu0 %vm6576_vm0, %v6575_v0  ;;  %6151 = vmatprep.subr.bf16.mxu0 %v6575_v0 }
 0x232   : > { %4522 = vrot.lane.b32.xlu0 %v6951_v12, %s6582_s23  ;;  %v3097_v61 = vpop.permute.xlu1 %3096  ;;  %v6005_v62 = vpop.f32.mrf.mxu1 }
 0x233   : > { %v3102_v63 = vsel %vm1738_vm4, %v3097_v61, 0  ;;  %6136 = vmatmul.mubr.msk.bf16.vlgmr.msra.gmra.mxu1 %vm1738_vm4, %v2969_v58 }
 0x234   : > { %v3045_v1 = vpop.permute.xlu0 %3044  ;;  %4624 = vrot.lane.b32.xlu1 %v6972_v37, %s6582_s23  ;;  %v1833_v3 = vpop.f32.mrf.mxu1  ;;  %6146 = vmatpush3.bf16.xpose.msra.mxu1 %v3102_v63 }
 0x235   : > { %6147 = vmatprep.mubr.msk.bf16.mxu1 %vm6576_vm0, %v6575_v0  ;;  %6157 = vmatprep.subr.bf16.mxu1 %v6575_v0 }
 0x236   : > { %4572 = vrot.lane.b32.xlu0 %v6968_v30, %s6582_s23  ;;  %v3147_v4 = vpop.permute.xlu1 %3146  ;;  %v6006_v6 = vpop.f32.mrf.mxu1 }
 0x237   : > { %v3152_v7 = vsel %vm1738_vm4, %v3147_v4, 0  ;;  %6142 = vmatmul.mubr.msk.bf16.vlgmr.msra.gmra.mxu0 %vm1738_vm4, %v3045_v1 }
 0x238   : > { %v3095_v8 = vpop.permute.xlu0 %3094  ;;  %4674 = vrot.lane.b32.xlu1 %v6988_v47, %s6582_s23  ;;  %v7219_v9 = vpop.f32.mrf.mxu0  ;;  %6152 = vmatpush3.bf16.xpose.msra.mxu0 %v3152_v7 }
 0x239   : > { %6153 = vmatprep.mubr.msk.bf16.mxu0 %vm6576_vm0, %v6575_v0  ;;  %6163 = vmatprep.subr.bf16.mxu0 %v6575_v0 }
 0x23a   : > { %4622 = vrot.lane.b32.xlu0 %v6984_v43, %s6582_s23  ;;  %v3197_v10 = vpop.permute.xlu1 %3196  ;;  %v6011_v11 = vpop.f32.mrf.mxu0 }
 0x23b   : > { %v3202_v13 = vsel %vm1738_vm4, %v3197_v10, 0  ;;  %6148 = vmatmul.mubr.msk.bf16.vlgmr.msra.gmra.mxu1 %vm1738_vm4, %v3095_v8 }
 0x23c   : > { %v3145_v15 = vpop.permute.xlu0 %3144  ;;  %4750 = vrot.lane.b32.xlu1 %v6873_v5, %s6583_s24  ;;  %v1884_v16 = vpop.f32.mrf.mxu0  ;;  %6158 = vmatpush3.bf16.xpose.msra.mxu1 %v3202_v13 }
 0x23d   : > { %6159 = vmatprep.mubr.msk.bf16.mxu1 %vm6576_vm0, %v6575_v0  ;;  %6169 = vmatprep.subr.bf16.mxu1 %v6575_v0 }
 0x23e   : > { %4672 = vrot.lane.b32.xlu0 %v6998_v51, %s6582_s23  ;;  %v3247_v17 = vpop.permute.xlu1 %3246  ;;  %v6012_v18 = vpop.f32.mrf.mxu0 }
 0x23f   : > { %v3252_v21 = vsel %vm1738_vm4, %v3247_v17, 0  ;;  %6154 = vmatmul.mubr.msk.bf16.vlgmr.msra.gmra.mxu0 %vm1738_vm4, %v3145_v15 }
 0x240   : > { %v3195_v22 = vpop.permute.xlu0 %3194  ;;  %4800 = vrot.lane.b32.xlu1 %v6887_v20, %s6583_s24  ;;  %v7239_v5 = vpop.f32.mrf.mxu1  ;;  %6164 = vmatpush3.bf16.xpose.msra.mxu0 %v3252_v21 }
 0x241   : > { %6165 = vmatprep.mubr.msk.bf16.mxu0 %vm6576_vm0, %v6575_v0  ;;  %6175 = vmatprep.subr.bf16.mxu0 %v6575_v0 }
 0x242   : > { %4748 = vrot.lane.b32.xlu0 %v6883_v14, %s6583_s24  ;;  %v3297_v23 = vpop.permute.xlu1 %3296  ;;  %v6017_v24 = vpop.f32.mrf.mxu1 }
 0x243   : > { %v3302_v25 = vsel %vm1738_vm4, %v3297_v23, 0  ;;  %6160 = vmatmul.mubr.msk.bf16.vlgmr.msra.gmra.mxu1 %vm1738_vm4, %v3195_v22 }
 0x244   : > { %v3245_v26 = vpop.permute.xlu0 %3244  ;;  %4850 = vrot.lane.b32.xlu1 %v6904_v35, %s6583_s24  ;;  %v1935_v20 = vpop.f32.mrf.mxu1  ;;  %6170 = vmatpush3.bf16.xpose.msra.mxu1 %v3302_v25 }
 0x245   : > { %6171 = vmatprep.mubr.msk.bf16.mxu1 %vm6576_vm0, %v6575_v0  ;;  %6181 = vmatprep.subr.bf16.mxu1 %v6575_v0 }
 0x246   : > { %4798 = vrot.lane.b32.xlu0 %v6900_v29, %s6583_s24  ;;  %v3347_v14 = vpop.permute.xlu1 %3346  ;;  %v6018_v27 = vpop.f32.mrf.mxu1 }
 0x247   : > { %v3352_v28 = vsel %vm1738_vm4, %v3347_v14, 0  ;;  %6166 = vmatmul.mubr.msk.bf16.vlgmr.msra.gmra.mxu0 %vm1738_vm4, %v3245_v26 }
 0x248   : > { %v3295_v31 = vpop.permute.xlu0 %3294  ;;  %4900 = vrot.lane.b32.xlu1 %v6921_v50, %s6583_s24  ;;  %v7259_v35 = vpop.f32.mrf.mxu0  ;;  %6176 = vmatpush3.bf16.xpose.msra.mxu0 %v3352_v28 }
 0x249   : > { %6177 = vmatprep.mubr.msk.bf16.mxu0 %vm6576_vm0, %v6575_v0  ;;  %6187 = vmatprep.subr.bf16.mxu0 %v6575_v0 }
 0x24a   : > { %4848 = vrot.lane.b32.xlu0 %v6917_v44, %s6583_s24  ;;  %v3397_v29 = vpop.permute.xlu1 %3396  ;;  %v6023_v32 = vpop.f32.mrf.mxu0 }
 0x24b   : > { %v3402_v33 = vsel %vm1738_vm4, %v3397_v29, 0  ;;  %6172 = vmatmul.mubr.msk.bf16.vlgmr.msra.gmra.mxu1 %vm1738_vm4, %v3295_v31 }
 0x24c   : > { %v3345_v34 = vpop.permute.xlu0 %3344  ;;  %4950 = vrot.lane.b32.xlu1 %v6938_v2, %s6583_s24  ;;  %v1986_v50 = vpop.f32.mrf.mxu0  ;;  %6182 = vmatpush3.bf16.xpose.msra.mxu1 %v3402_v33 }
 0x24d   : > { %6183 = vmatprep.mubr.msk.bf16.mxu1 %vm6576_vm0, %v6575_v0  ;;  %6193 = vmatprep.subr.bf16.mxu1 %v6575_v0 }
 0x24e   : > { %4898 = vrot.lane.b32.xlu0 %v6934_v59, %s6583_s24  ;;  %v3473_v44 = vpop.permute.xlu1 %3472  ;;  %v6024_v36 = vpop.f32.mrf.mxu0 }
 0x24f   : > { %v3478_v38 = vsel %vm1738_vm4, %v3473_v44, 0  ;;  %6178 = vmatmul.mubr.msk.bf16.vlgmr.msra.gmra.mxu0 %vm1738_vm4, %v3345_v34 }
 0x250   : > { %v3395_v39 = vpop.permute.xlu0 %3394  ;;  %5000 = vrot.lane.b32.xlu1 %v6955_v19, %s6583_s24  ;;  %v7279_v2 = vpop.f32.mrf.mxu1  ;;  %6188 = vmatpush3.bf16.xpose.msra.mxu0 %v3478_v38 }
 0x251   : > { %6189 = vmatprep.mubr.msk.bf16.mxu0 %vm6576_vm0, %v6575_v0  ;;  %6199 = vmatprep.subr.bf16.mxu0 %v6575_v0 }
 0x252   : > { %4948 = vrot.lane.b32.xlu0 %v6951_v12, %s6583_s24  ;;  %v3523_v59 = vpop.permute.xlu1 %3522  ;;  %v6029_v40 = vpop.f32.mrf.mxu1 }
 0x253   : > { %v3528_v41 = vsel %vm1738_vm4, %v3523_v59, 0  ;;  %6184 = vmatmul.mubr.msk.bf16.vlgmr.msra.gmra.mxu1 %vm1738_vm4, %v3395_v39 }
 0x254   : > { %v3471_v42 = vpop.permute.xlu0 %3470  ;;  %5050 = vrot.lane.b32.xlu1 %v6972_v37, %s6583_s24  ;;  %v2037_v19 = vpop.f32.mrf.mxu1  ;;  %6194 = vmatpush3.bf16.xpose.msra.mxu1 %v3528_v41 }
 0x255   : > { %6195 = vmatprep.mubr.msk.bf16.mxu1 %vm6576_vm0, %v6575_v0  ;;  %6205 = vmatprep.subr.bf16.mxu1 %v6575_v0 }
 0x256   : > { %4998 = vrot.lane.b32.xlu0 %v6968_v30, %s6583_s24  ;;  %v3573_v12 = vpop.permute.xlu1 %3572  ;;  %v6030_v45 = vpop.f32.mrf.mxu1 }
 0x257   : > { %v3578_v48 = vsel %vm1738_vm4, %v3573_v12, 0  ;;  %6190 = vmatmul.mubr.msk.bf16.vlgmr.msra.gmra.mxu0 %vm1738_vm4, %v3471_v42 }
 0x258   : > { %v3521_v49 = vpop.permute.xlu0 %3520  ;;  %5100 = vrot.lane.b32.xlu1 %v6988_v47, %s6583_s24  ;;  %v7299_v37 = vpop.f32.mrf.mxu0  ;;  %6200 = vmatpush3.bf16.xpose.msra.mxu0 %v3578_v48 }
 0x259   : > { %6201 = vmatprep.mubr.msk.bf16.mxu0 %vm6576_vm0, %v6575_v0  ;;  %6211 = vmatprep.subr.bf16.mxu0 %v6575_v0 }
 0x25a   : > { %5048 = vrot.lane.b32.xlu0 %v6984_v43, %s6583_s24  ;;  %v3623_v30 = vpop.permute.xlu1 %3622  ;;  %v6035_v52 = vpop.f32.mrf.mxu0 }
 0x25b   : > { %v3628_v53 = vsel %vm1738_vm4, %v3623_v30, 0  ;;  %6196 = vmatmul.mubr.msk.bf16.vlgmr.msra.gmra.mxu1 %vm1738_vm4, %v3521_v49  ;;  %v2143_v49 = vmax.f32 %v7179_v46, 0.0  ;;  %v7391_v52 = vstv %s2142_s25  ;;  %s356_s25 = scalar_lea.vmem %s7667_s3, %s355_s20 }
 0x25c   : > { %v3571_v54 = vpop.permute.xlu0 %3570  ;;  %5098 = vrot.lane.b32.xlu1 %v6998_v51, %s6583_s24  ;;  %v2088_v47 = vpop.f32.mrf.mxu0  ;;  %6206 = vmatpush3.bf16.xpose.msra.mxu1 %v3628_v53 }
 0x25d   : > { %6207 = vmatprep.mubr.msk.bf16.mxu1 %vm6576_vm0, %v6575_v0  ;;  %6217 = vmatprep.subr.bf16.mxu1 %v6575_v0 }
 0x25e   : > { %v3673_v43 = vpop.permute.xlu1 %3672  ;;  %v6036_v55 = vpop.f32.mrf.mxu0 }
 0x25f   : > { %v3678_v56 = vsel %vm1738_vm4, %v3673_v43, 0  ;;  %6202 = vmatmul.mubr.msk.bf16.vlgmr.msra.gmra.mxu0 %vm1738_vm4, %v3571_v54  ;;  %v7394_v43 = vstv %s5598_s30  ;;  %s5303_s30 = sld [smem:[#allocation4]] }
 0x260   : > { %v3621_v57 = vpop.permute.xlu0 %3620  ;;  %v7315_v58 = vpop.f32.mrf.mxu1  ;;  %6212 = vmatpush3.bf16.xpose.msra.mxu0 %v3678_v56  ;;  %6213 = vmatprep.mubr.msk.bf16.mxu0 %vm6576_vm0, %v6575_v0 }
 0x261   : > { %6223 = vmatprep.subr.bf16.mxu0 %v6575_v0 }
 0x262   : > { %v3723_v51 = vpop.permute.xlu1 %3722  ;;  %v6041_v61 = vpop.f32.mrf.mxu1 }
 0x263   : > { %v3728_v62 = vsel %vm1738_vm4, %v3723_v51, 0  ;;  %6208 = vmatmul.mubr.msk.bf16.vlgmr.msra.gmra.mxu1 %vm1738_vm4, %v3621_v57  ;;  %v2152_v57 = vmul.f32 %v7391_v52, %v2143_v49 }
 0x264   : > { %v3671_v63 = vpop.permute.xlu0 %3670  ;;  %v2139_v1 = vpop.f32.mrf.mxu1  ;;  %6218 = vmatpush3.bf16.xpose.msra.mxu1 %v3728_v62  ;;  %6219 = vmatprep.mubr.msk.bf16.mxu1 %vm6576_vm0, %v6575_v0 }
 0x265   : > { %6229 = vmatprep.subr.bf16.mxu1 %v6575_v0 }
 0x266   : > { %v3773_v3 = vpop.permute.xlu1 %3772  ;;  %v6042_v4 = vpop.f32.mrf.mxu1 }
 0x267   : > { %v3778_v6 = vsel %vm1738_vm4, %v3773_v3, 0  ;;  %6214 = vmatmul.mubr.msk.bf16.vlgmr.msra.gmra.mxu0 %vm1738_vm4, %v3671_v63 }
 0x268   : > { %v3721_v7 = vpop.permute.xlu0 %3720  ;;  %6224 = vmatpush3.bf16.xpose.msra.mxu0 %v3778_v6  ;;  %6225 = vmatprep.mubr.msk.bf16.mxu0 %vm6576_vm0, %v6575_v0  ;;  %v2144_v6 = vmax.f32 %v7199_v60, 0.0 }
 0x269   : > { %6235 = vmatprep.subr.bf16.mxu0 %v6575_v0 }
 0x26a   : > { %v3823_v8 = vpop.permute.xlu1 %3822 }
 0x26b   : > { %v3828_v10 = vsel %vm1738_vm4, %v3823_v8, 0  ;;  %6220 = vmatmul.mubr.msk.bf16.vlgmr.msra.gmra.mxu1 %vm1738_vm4, %v3721_v7 }
 0x26c   : > { %v3771_v11 = vpop.permute.xlu0 %3770  ;;  %6230 = vmatpush3.bf16.xpose.msra.mxu1 %v3828_v10  ;;  %6231 = vmatprep.mubr.msk.bf16.mxu1 %vm6576_vm0, %v6575_v0 }
 0x26d   : > { %6241 = vmatprep.subr.bf16.mxu1 %v6575_v0 }
 0x26e   : > { %v3899_v13 = vpop.permute.xlu1 %3898 }
 0x26f   : > { %v3904_v15 = vsel %vm1738_vm4, %v3899_v13, 0  ;;  %6226 = vmatmul.mubr.msk.bf16.vlgmr.msra.gmra.mxu0 %vm1738_vm4, %v3771_v11 }
 0x270   : > { %v3821_v16 = vpop.permute.xlu0 %3820  ;;  %6236 = vmatpush3.bf16.xpose.msra.mxu0 %v3904_v15  ;;  %6237 = vmatprep.mubr.msk.bf16.mxu0 %vm6576_vm0, %v6575_v0 }
 0x271   : > { %6247 = vmatprep.subr.bf16.mxu0 %v6575_v0 }
 0x272   : > { %v3949_v17 = vpop.permute.xlu1 %3948 }
 0x273   : > { %v3954_v18 = vsel %vm1738_vm4, %v3949_v17, 0  ;;  %6232 = vmatmul.mubr.msk.bf16.vlgmr.msra.gmra.mxu1 %vm1738_vm4, %v3821_v16  ;;  %v2153_v16 = vmul.f32 %v7391_v52, %v2144_v6 }
 0x274   : > { %v3897_v21 = vpop.permute.xlu0 %3896  ;;  %6242 = vmatpush3.bf16.xpose.msra.mxu1 %v3954_v18  ;;  %6243 = vmatprep.mubr.msk.bf16.mxu1 %vm6576_vm0, %v6575_v0 }
 0x275   : > { %6253 = vmatprep.subr.bf16.mxu1 %v6575_v0 }
 0x276   : > { %v3999_v22 = vpop.permute.xlu1 %3998 }
 0x277   : > { %v4004_v23 = vsel %vm1738_vm4, %v3999_v22, 0  ;;  %6238 = vmatmul.mubr.msk.bf16.vlgmr.msra.gmra.mxu0 %vm1738_vm4, %v3897_v21 }
 0x278   : > { %v3947_v24 = vpop.permute.xlu0 %3946  ;;  %6248 = vmatpush3.bf16.xpose.msra.mxu0 %v4004_v23  ;;  %6249 = vmatprep.mubr.msk.bf16.mxu0 %vm6576_vm0, %v6575_v0 }
 0x279   : > { %6259 = vmatprep.subr.bf16.mxu0 %v6575_v0 }
 0x27a   : > { %v4049_v25 = vpop.permute.xlu1 %4048 }
 0x27b   : > { %v4054_v26 = vsel %vm1738_vm4, %v4049_v25, 0  ;;  %6244 = vmatmul.mubr.msk.bf16.vlgmr.msra.gmra.mxu1 %vm1738_vm4, %v3947_v24  ;;  %v2145_v25 = vmax.f32 %v7219_v9, 0.0 }
 0x27c   : > { %v3997_v20 = vpop.permute.xlu0 %3996  ;;  %6254 = vmatpush3.bf16.xpose.msra.mxu1 %v4054_v26  ;;  %6255 = vmatprep.mubr.msk.bf16.mxu1 %vm6576_vm0, %v6575_v0 }
 0x27d   : > { %6265 = vmatprep.subr.bf16.mxu1 %v6575_v0 }
 0x27e   : > { %v4099_v14 = vpop.permute.xlu1 %4098 }
 0x27f   : > { %v4104_v27 = vsel %vm1738_vm4, %v4099_v14, 0  ;;  %6250 = vmatmul.mubr.msk.bf16.vlgmr.msra.gmra.mxu0 %vm1738_vm4, %v3997_v20 }
 0x280   : > { %v4047_v28 = vpop.permute.xlu0 %4046  ;;  %6260 = vmatpush3.bf16.xpose.msra.mxu0 %v4104_v27  ;;  %6261 = vmatprep.mubr.msk.bf16.mxu0 %vm6576_vm0, %v6575_v0 }
 0x281   : > { %6271 = vmatprep.subr.bf16.mxu0 %v6575_v0 }
 0x282   : > { %v4149_v31 = vpop.permute.xlu1 %4148 }
 0x283   : > { %v4154_v29 = vsel %vm1738_vm4, %v4149_v31, 0  ;;  %6256 = vmatmul.mubr.msk.bf16.vlgmr.msra.gmra.mxu1 %vm1738_vm4, %v4047_v28 }
 0x284   : > { %v4097_v32 = vpop.permute.xlu0 %4096  ;;  %6266 = vmatpush3.bf16.xpose.msra.mxu1 %v4154_v29  ;;  %6267 = vmatprep.mubr.msk.bf16.mxu1 %vm6576_vm0, %v6575_v0  ;;  %v2154_v29 = vmul.f32 %v7391_v52, %v2145_v25 }
 0x285   : > { %6277 = vmatprep.subr.bf16.mxu1 %v6575_v0 }
 0x286   : > { %v4199_v33 = vpop.permute.xlu1 %4198 }
 0x287   : > { %v4204_v34 = vsel %vm1738_vm4, %v4199_v33, 0  ;;  %6262 = vmatmul.mubr.msk.bf16.vlgmr.msra.gmra.mxu0 %vm1738_vm4, %v4097_v32 }
 0x288   : > { %v4147_v50 = vpop.permute.xlu0 %4146  ;;  %6272 = vmatpush3.bf16.xpose.msra.mxu0 %v4204_v34  ;;  %6273 = vmatprep.mubr.msk.bf16.mxu0 %vm6576_vm0, %v6575_v0 }
 0x289   : > { %6283 = vmatprep.subr.bf16.mxu0 %v6575_v0 }
 0x28a   : > { %v4249_v44 = vpop.permute.xlu1 %4248 }
 0x28b   : > { %v4254_v36 = vsel %vm1738_vm4, %v4249_v44, 0  ;;  %6268 = vmatmul.mubr.msk.bf16.vlgmr.msra.gmra.mxu1 %vm1738_vm4, %v4147_v50 }
 0x28c   : > { %v4197_v38 = vpop.permute.xlu0 %4196  ;;  %6278 = vmatpush3.bf16.xpose.msra.mxu1 %v4254_v36  ;;  %6279 = vmatprep.mubr.msk.bf16.mxu1 %vm6576_vm0, %v6575_v0 }
 0x28d   : > { %6289 = vmatprep.subr.bf16.mxu1 %v6575_v0 }
 0x28e   : > { %v4325_v39 = vpop.permute.xlu1 %4324 }
 0x28f   : > { %v4330_v59 = vsel %vm1738_vm4, %v4325_v39, 0  ;;  %6274 = vmatmul.mubr.msk.bf16.vlgmr.msra.gmra.mxu0 %vm1738_vm4, %v4197_v38  ;;  %v2146_v38 = vmax.f32 %v7239_v5, 0.0 }
 0x290   : > { %v4247_v40 = vpop.permute.xlu0 %4246  ;;  %6284 = vmatpush3.bf16.xpose.msra.mxu0 %v4330_v59  ;;  %6285 = vmatprep.mubr.msk.bf16.mxu0 %vm6576_vm0, %v6575_v0 }
 0x291   : > { %6295 = vmatprep.subr.bf16.mxu0 %v6575_v0 }
 0x292   : > { %v4375_v41 = vpop.permute.xlu1 %4374 }
 0x293   : > { %v4380_v42 = vsel %vm1738_vm4, %v4375_v41, 0  ;;  %6280 = vmatmul.mubr.msk.bf16.vlgmr.msra.gmra.mxu1 %vm1738_vm4, %v4247_v40 }
 0x294   : > { %v4323_v19 = vpop.permute.xlu0 %4322  ;;  %6290 = vmatpush3.bf16.xpose.msra.mxu1 %v4380_v42  ;;  %6291 = vmatprep.mubr.msk.bf16.mxu1 %vm6576_vm0, %v6575_v0 }
 0x295   : > { %6301 = vmatprep.subr.bf16.mxu1 %v6575_v0 }
 0x296   : > { %v4425_v12 = vpop.permute.xlu1 %4424 }
 0x297   : > { %v4430_v45 = vsel %vm1738_vm4, %v4425_v12, 0  ;;  %6286 = vmatmul.mubr.msk.bf16.vlgmr.msra.gmra.mxu0 %vm1738_vm4, %v4323_v19  ;;  %v2155_v12 = vmul.f32 %v7391_v52, %v2146_v38 }
 0x298   : > { %v4373_v48 = vpop.permute.xlu0 %4372  ;;  %6296 = vmatpush3.bf16.xpose.msra.mxu0 %v4430_v45  ;;  %6297 = vmatprep.mubr.msk.bf16.mxu0 %vm6576_vm0, %v6575_v0 }
 0x299   : > { %6307 = vmatprep.subr.bf16.mxu0 %v6575_v0 }
 0x29a   : > { %v4475_v30 = vpop.permute.xlu1 %4474 }
 0x29b   : > { %v4480_v53 = vsel %vm1738_vm4, %v4475_v30, 0  ;;  %v2215_v47 = vpop.f32.mrf.mxu0  ;;  %6292 = vmatmul.mubr.msk.bf16.vlgmr.msra.gmra.mxu1 %vm1738_vm4, %v4373_v48 }
 0x29c   : > { %v4423_v54 = vpop.permute.xlu0 %4422  ;;  %v2593_v55 = vmax.f32 %v2215_v47, 0.0  ;;  %6302 = vmatpush3.bf16.xpose.msra.mxu1 %v4480_v53  ;;  %6303 = vmatprep.mubr.msk.bf16.mxu1 %vm6576_vm0, %v6575_v0  ;;  %v2147_v47 = vmax.f32 %v7259_v35, 0.0 }
 0x29d   : > { %v6047_v56 = vpop.f32.mrf.mxu0  ;;  %6313 = vmatprep.subr.bf16.mxu1 %v6575_v0 }
 0x29e   : > { %v2602_v46 = vmul.f32 %v7394_v43, %v2593_v55  ;;  %v4525_v51 = vpop.permute.xlu1 %4524 }
 0x29f   : > { %v4530_v61 = vsel %vm1738_vm4, %v4525_v51, 0  ;;  %v2218_v63 = vpop.f32.mrf.mxu0  ;;  %6298 = vmatmul.mubr.msk.bf16.vlgmr.msra.gmra.mxu0 %vm1738_vm4, %v4423_v54 }
 0x2a0   : > { %v4473_v62 = vpop.permute.xlu0 %4472  ;;  %v7404_v1 = vadd.f32 %v2602_v46, %v2152_v57  ;;  %6308 = vmatpush3.bf16.xpose.msra.mxu0 %v4530_v61  ;;  %6309 = vmatprep.mubr.msk.bf16.mxu0 %vm6576_vm0, %v6575_v0 }
 0x2a1   : > { %v6048_v3 = vpop.f32.mrf.mxu0  ;;  %6319 = vmatprep.subr.bf16.mxu0 %v6575_v0 }
 0x2a2   : > { %v4575_v4 = vpop.permute.xlu1 %4574 }
 0x2a3   : > { %v4580_v7 = vsel %vm1738_vm4, %v4575_v4, 0  ;;  %6304 = vmatmul.mubr.msk.bf16.vlgmr.msra.gmra.mxu1 %vm1738_vm4, %v4473_v62  ;;  %v2156_v62 = vmul.f32 %v7391_v52, %v2147_v47 }
 0x2a4   : > { %v4523_v8 = vpop.permute.xlu0 %4522  ;;  %6314 = vmatpush3.bf16.xpose.msra.mxu1 %v4580_v7  ;;  %6315 = vmatprep.mubr.msk.bf16.mxu1 %vm6576_vm0, %v6575_v0 }
 0x2a5   : > { %v2268_v10 = vpop.f32.mrf.mxu1  ;;  %6325 = vmatprep.subr.bf16.mxu1 %v6575_v0 }
 0x2a6   : > { %v2594_v11 = vmax.f32 %v2268_v10, 0.0  ;;  %v4625_v15 = vpop.permute.xlu1 %4624  ;;  %v2148_v10 = vmax.f32 %v7279_v2, 0.0 }
 0x2a7   : > { %v6053_v13 = vpop.f32.mrf.mxu1  ;;  %v4630_v60 = vsel %vm1738_vm4, %v4625_v15, 0  ;;  %6310 = vmatmul.mubr.msk.bf16.vlgmr.msra.gmra.mxu0 %vm1738_vm4, %v4523_v8 }
 0x2a8   : > { %v2603_v17 = vmul.f32 %v7394_v43, %v2594_v11  ;;  %v4573_v18 = vpop.permute.xlu0 %4572  ;;  %6320 = vmatpush3.bf16.xpose.msra.mxu0 %v4630_v60  ;;  %6321 = vmatprep.mubr.msk.bf16.mxu0 %vm6576_vm0, %v6575_v0 }
 0x2a9   : > { %v2271_v21 = vpop.f32.mrf.mxu1  ;;  %6331 = vmatprep.subr.bf16.mxu0 %v6575_v0 }
 0x2aa   : > { %v7421_v22 = vadd.f32 %v2603_v17, %v2153_v16  ;;  %v4675_v24 = vpop.permute.xlu1 %4674 }
 0x2ab   : > { %v6054_v23 = vpop.f32.mrf.mxu1  ;;  %v4680_v26 = vsel %vm1738_vm4, %v4675_v24, 0  ;;  %v2321_v14 = vpop.f32.mrf.mxu0  ;;  %6316 = vmatmul.mubr.msk.bf16.vlgmr.msra.gmra.mxu1 %vm1738_vm4, %v4573_v18  ;;  %v2157_v18 = vmul.f32 %v7391_v52, %v2148_v10 }
 0x2ac   : > { %v4623_v20 = vpop.permute.xlu0 %4622  ;;  %v2595_v27 = vmax.f32 %v2321_v14, 0.0  ;;  %6326 = vmatpush3.bf16.xpose.msra.mxu1 %v4680_v26  ;;  %6327 = vmatprep.mubr.msk.bf16.mxu1 %vm6576_vm0, %v6575_v0  ;;  %v2149_v14 = vmax.f32 %v7299_v37, 0.0 }
 0x2ad   : > { %v6059_v28 = vpop.f32.mrf.mxu0  ;;  %6337 = vmatprep.subr.bf16.mxu1 %v6575_v0 }
 0x2ae   : > { %v4751_v31 = vpop.permute.xlu1 %4750  ;;  %v2604_v32 = vmul.f32 %v7394_v43, %v2595_v27 }
 0x2af   : > { %v4756_v9 = vsel %vm1738_vm4, %v4751_v31, 0  ;;  %6322 = vmatmul.mubr.msk.bf16.vlgmr.msra.gmra.mxu0 %vm1738_vm4, %v4623_v20  ;;  %v2324_v34 = vpop.f32.mrf.mxu0 }
 0x2b0   : > { %v4673_v33 = vpop.permute.xlu0 %4672  ;;  %6332 = vmatpush3.bf16.xpose.msra.mxu0 %v4756_v9  ;;  %6333 = vmatprep.mubr.msk.bf16.mxu0 %vm6576_vm0, %v6575_v0  ;;  %v7436_v50 = vadd.f32 %v2604_v32, %v2154_v29  ;;  %v2158_v9 = vmul.f32 %v7391_v52, %v2149_v14 }
 0x2b1   : > { %6343 = vmatprep.subr.bf16.mxu0 %v6575_v0  ;;  %v6060_v44 = vpop.f32.mrf.mxu0 }
 0x2b2   : > { %v4801_v36 = vpop.permute.xlu1 %4800 }
 0x2b3   : > { %v4806_v39 = vsel %vm1738_vm4, %v4801_v36, 0  ;;  %v2374_v40 = vpop.f32.mrf.mxu1  ;;  %6328 = vmatmul.mubr.msk.bf16.vlgmr.msra.gmra.mxu1 %vm1738_vm4, %v4673_v33  ;;  %v2150_v36 = vmax.f32 %v7315_v58, 0.0 }
 0x2b4   : > { %v4749_v59 = vpop.permute.xlu0 %4748  ;;  %v2596_v41 = vmax.f32 %v2374_v40, 0.0  ;;  %6338 = vmatpush3.bf16.xpose.msra.mxu1 %v4806_v39  ;;  %6339 = vmatprep.mubr.msk.bf16.mxu1 %vm6576_vm0, %v6575_v0 }
 0x2b5   : > { %v6065_v42 = vpop.f32.mrf.mxu1  ;;  %6349 = vmatprep.subr.bf16.mxu1 %v6575_v0  ;;  %v2159_v40 = vmul.f32 %v7391_v52, %v2150_v36 }
 0x2b6   : > { %v4851_v19 = vpop.permute.xlu1 %4850  ;;  %v2605_v45 = vmul.f32 %v7394_v43, %v2596_v41 }
 0x2b7   : > { %v4856_v5 = vsel %vm1738_vm4, %v4851_v19, 0  ;;  %6334 = vmatmul.mubr.msk.bf16.vlgmr.msra.gmra.mxu0 %vm1738_vm4, %v4749_v59  ;;  %v2377_v49 = vpop.f32.mrf.mxu1  ;;  %v3027_v19 = vstv %s5607_s9  ;;  %s332_s9 = sand.u32 1, %s6564_s27  }
 0x2b8   : > { %v4799_v48 = vpop.permute.xlu0 %4798  ;;  %6344 = vmatpush3.bf16.xpose.msra.mxu0 %v4856_v5  ;;  %6345 = vmatprep.mubr.msk.bf16.mxu0 %vm6576_vm0, %v6575_v0  ;;  %v7451_v30 = vadd.f32 %v2605_v45, %v2155_v12  ;;  %s5318_s19 = scalar_lea.sflag [#allocation6], %s332_s9 }
 0x2b9   : > { %6355 = vmatprep.subr.bf16.mxu0 %v6575_v0  ;;  %v6066_v53 = vpop.f32.mrf.mxu1 }
 0x2ba   : > { %v4901_v54 = vpop.permute.xlu1 %4900 }
 0x2bb   : > { %v4906_v55 = vsel %vm1738_vm4, %v4901_v54, 0  ;;  %v2427_v57 = vpop.f32.mrf.mxu0  ;;  %6340 = vmatmul.mubr.msk.bf16.vlgmr.msra.gmra.mxu1 %vm1738_vm4, %v4799_v48 }
 0x2bc   : > { %v4849_v56 = vpop.permute.xlu0 %4848  ;;  %v2597_v46 = vmax.f32 %v2427_v57, 0.0  ;;  %6350 = vmatpush3.bf16.xpose.msra.mxu1 %v4906_v55  ;;  %6351 = vmatprep.mubr.msk.bf16.mxu1 %vm6576_vm0, %v6575_v0 }
 0x2bd   : > { %v6071_v51 = vpop.f32.mrf.mxu0  ;;  %6361 = vmatprep.subr.bf16.mxu1 %v6575_v0 }
 0x2be   : > { %v4951_v61 = vpop.permute.xlu1 %4950  ;;  %v2606_v63 = vmul.f32 %v7394_v43, %v2597_v46 }
 0x2bf   : > { %v4956_v35 = vsel %vm1738_vm4, %v4951_v61, 0  ;;  %6346 = vmatmul.mubr.msk.bf16.vlgmr.msra.gmra.mxu0 %vm1738_vm4, %v4849_v56  ;;  %v2430_v4 = vpop.f32.mrf.mxu0 }
 0x2c0   : > { %v4899_v3 = vpop.permute.xlu0 %4898  ;;  %6356 = vmatpush3.bf16.xpose.msra.mxu0 %v4956_v35  ;;  %6357 = vmatprep.mubr.msk.bf16.mxu0 %vm6576_vm0, %v6575_v0  ;;  %v7466_v6 = vadd.f32 %v2606_v63, %v2156_v62 }
 0x2c1   : > { %6367 = vmatprep.subr.bf16.mxu0 %v6575_v0  ;;  %v6072_v7 = vpop.f32.mrf.mxu0 }
 0x2c2   : > { %v5001_v8 = vpop.permute.xlu1 %5000 }
 0x2c3   : > { %v5006_v11 = vsel %vm1738_vm4, %v5001_v8, 0  ;;  %v2480_v15 = vpop.f32.mrf.mxu1  ;;  %6352 = vmatmul.mubr.msk.bf16.vlgmr.msra.gmra.mxu1 %vm1738_vm4, %v4899_v3 }
 0x2c4   : > { %v4949_v13 = vpop.permute.xlu0 %4948  ;;  %v2598_v16 = vmax.f32 %v2480_v15, 0.0  ;;  %6362 = vmatpush3.bf16.xpose.msra.mxu1 %v5006_v11  ;;  %6363 = vmatprep.mubr.msk.bf16.mxu1 %vm6576_vm0, %v6575_v0 }
 0x2c5   : > { %v6077_v17 = vpop.f32.mrf.mxu1  ;;  %6373 = vmatprep.subr.bf16.mxu1 %v6575_v0 }
 0x2c6   : > { %v5051_v60 = vpop.permute.xlu1 %5050  ;;  %v2607_v21 = vmul.f32 %v7394_v43, %v2598_v16 }
 0x2c7   : > { %v5056_v2 = vsel %vm1738_vm4, %v5051_v60, 0  ;;  %6358 = vmatmul.mubr.msk.bf16.vlgmr.msra.gmra.mxu0 %vm1738_vm4, %v4949_v13  ;;  %v2483_v24 = vpop.f32.mrf.mxu1 }
 0x2c8   : > { %v4999_v23 = vpop.permute.xlu0 %4998  ;;  %6368 = vmatpush3.bf16.xpose.msra.mxu0 %v5056_v2  ;;  %6369 = vmatprep.mubr.msk.bf16.mxu0 %vm6576_vm0, %v6575_v0  ;;  %v7481_v25 = vadd.f32 %v2607_v21, %v2157_v18 }
 0x2c9   : > { %v6078_v26 = vpop.f32.mrf.mxu1 }
 0x2ca   : > { %v5101_v20 = vpop.permute.xlu1 %5100 }
 0x2cb   : > { %v5106_v27 = vsel %vm1738_vm4, %v5101_v20, 0  ;;  %v2533_v28 = vpop.f32.mrf.mxu0  ;;  %6364 = vmatmul.mubr.msk.bf16.vlgmr.msra.gmra.mxu1 %vm1738_vm4, %v4999_v23 }
 0x2cc   : > { %v2599_v31 = vmax.f32 %v2533_v28, 0.0  ;;  %6374 = vmatpush3.bf16.xpose.msra.mxu1 %v5106_v27  ;;  %6375 = vmatprep.mubr.msk.bf16.mxu1 %vm6576_vm0, %v6575_v0  ;;  %v5049_v29 = vpop.permute.xlu0 %5048 }
 0x2cd   : > { %v6083_v32 = vpop.f32.mrf.mxu0 }
 0x2ce   : > { %v2608_v33 = vmul.f32 %v7394_v43, %v2599_v31  ;;  %v5099_v38 = vpop.permute.xlu1 %5098 }
 0x2cf   : > { %6370 = vmatmul.mubr.msk.bf16.vlgmr.msra.gmra.mxu0 %vm1738_vm4, %v5049_v29  ;;  %v2536_v37 = vpop.f32.mrf.mxu0 }
 0x2d0   : > { %v2616_v34 = vadd.f32 %v2608_v33, %v2158_v9 }
 0x2d1   : > { %v6084_v44 = vpop.f32.mrf.mxu0 }
 0x2d3   : > { %v2586_v39 = vpop.f32.mrf.mxu1  ;;  %6376 = vmatmul.mubr.msk.bf16.vlgmr.msra.gmra.mxu1 %vm1738_vm4, %v5099_v38 }
 0x2d4   : > { %v2600_v59 = vmax.f32 %v2586_v39, 0.0 }
 0x2d5   : > { %v6089_v0 = vpop.f32.mrf.mxu1 }
 0x2d6   : > { %v2609_v41 = vmul.f32 %v7394_v43, %v2600_v59  ;;  %v3453_v59 = vstv %s5616_s10  ;;  %s5654_s10 = sshll.u32 %s6650_s6, 4 }
 0x2d7   : > { %v2662_v42 = vpop.f32.mrf.mxu0  ;;  %v2589_v12 = vpop.f32.mrf.mxu1 }
 0x2d8   : > { %v3019_v45 = vmax.f32 %v2662_v42, 0.0  ;;  %v2617_v5 = vadd.f32 %v2609_v41, %v2159_v40 }
 0x2d9   : > { %v6095_v48 = vpop.f32.mrf.mxu0  ;;  %v6090_v53 = vpop.f32.mrf.mxu1 }
 0x2da   : > { %v3028_v49 = vmul.f32 %v3027_v19, %v3019_v45 }
 0x2db   : > { %v2665_v54 = vpop.f32.mrf.mxu0  ;;  %v2712_v47 = vpop.f32.mrf.mxu1 }
 0x2dc   : > { %v3036_v58 = vadd.f32 %v3028_v49, %v7404_v1  ;;  %v3020_v55 = vmax.f32 %v2712_v47, 0.0 }
 0x2dd   : > { %v6096_v56 = vpop.f32.mrf.mxu0  ;;  %v6101_v57 = vpop.f32.mrf.mxu1 }
 0x2de   : > { %v3029_v46 = vmul.f32 %v3027_v19, %v3020_v55 }
 0x2df   : > { %v2762_v51 = vpop.f32.mrf.mxu0  ;;  %v2715_v52 = vpop.f32.mrf.mxu1 }
 0x2e0   : > { %v3021_v61 = vmax.f32 %v2762_v51, 0.0  ;;  %v3037_v43 = vadd.f32 %v3029_v46, %v7421_v22 }
 0x2e1   : > { %v6107_v62 = vpop.f32.mrf.mxu0  ;;  %v6102_v35 = vpop.f32.mrf.mxu1 }
 0x2e2   : > { %v3030_v63 = vmul.f32 %v3027_v19, %v3021_v61 }
 0x2e3   : > { %v2765_v3 = vpop.f32.mrf.mxu0  ;;  %v2812_v7 = vpop.f32.mrf.mxu1 }
 0x2e4   : > { %v3038_v4 = vadd.f32 %v3030_v63, %v7436_v50  ;;  %v3022_v8 = vmax.f32 %v2812_v7, 0.0 }
 0x2e5   : > { %v6108_v10 = vpop.f32.mrf.mxu0  ;;  %v6113_v1 = vpop.f32.mrf.mxu1 }
 0x2e6   : > { %v3031_v11 = vmul.f32 %v3027_v19, %v3022_v8 }
 0x2e7   : > { %v2862_v13 = vpop.f32.mrf.mxu0  ;;  %v2815_v15 = vpop.f32.mrf.mxu1 }
 0x2e8   : > { %v3023_v16 = vmax.f32 %v2862_v13, 0.0  ;;  %v3039_v17 = vadd.f32 %v3031_v11, %v7451_v30 }
 0x2e9   : > { %v6119_v60 = vpop.f32.mrf.mxu0  ;;  %v6114_v21 = vpop.f32.mrf.mxu1 }
 0x2ea   : > { %v3032_v18 = vmul.f32 %v3027_v19, %v3023_v16 }
 0x2eb   : > { %v2865_v22 = vpop.f32.mrf.mxu0  ;;  %v2912_v23 = vpop.f32.mrf.mxu1 }
 0x2ec   : > { %v3040_v2 = vadd.f32 %v3032_v18, %v7466_v6  ;;  %v3024_v24 = vmax.f32 %v2912_v23, 0.0 }
 0x2ed   : > { %v6120_v26 = vpop.f32.mrf.mxu0  ;;  %v6125_v50 = vpop.f32.mrf.mxu1 }
 0x2ee   : > { %v3033_v20 = vmul.f32 %v3027_v19, %v3024_v24 }
 0x2ef   : > { %v2962_v14 = vpop.f32.mrf.mxu0  ;;  %v2915_v27 = vpop.f32.mrf.mxu1 }
 0x2f0   : > { %v3025_v28 = vmax.f32 %v2962_v14, 0.0  ;;  %v3041_v31 = vadd.f32 %v3033_v20, %v7481_v25 }
 0x2f1   : > { %v6131_v29 = vpop.f32.mrf.mxu0  ;;  %v6126_v30 = vpop.f32.mrf.mxu1 }
 0x2f2   : > { %v3034_v32 = vmul.f32 %v3027_v19, %v3025_v28 }
 0x2f3   : > { %v2965_v9 = vpop.f32.mrf.mxu0  ;;  %v3012_v37 = vpop.f32.mrf.mxu1 }
 0x2f4   : > { %v3042_v33 = vadd.f32 %v3034_v32, %v2616_v34  ;;  %v3026_v44 = vmax.f32 %v3012_v37, 0.0 }
 0x2f5   : > { %v6132_v36 = vpop.f32.mrf.mxu0  ;;  %v6137_v6 = vpop.f32.mrf.mxu1 }
 0x2f6   : > { %v3035_v38 = vmul.f32 %v3027_v19, %v3026_v44  ;;  %v3879_v44 = vstv %s5625_s14  ;;  %s333_s14 = scalar_lea.vmem [#allocation8], %s332_s9 }
 0x2f7   : > { %v3088_v39 = vpop.f32.mrf.mxu0  ;;  %v3015_v0 = vpop.f32.mrf.mxu1 }
 0x2f8   : > { %v3445_v40 = vmax.f32 %v3088_v39, 0.0  ;;  %v3043_v41 = vadd.f32 %v3035_v38, %v2617_v5 }
 0x2f9   : > { %v6143_v42 = vpop.f32.mrf.mxu0  ;;  %v6138_v45 = vpop.f32.mrf.mxu1 }
 0x2fa   : > { %v3454_v12 = vmul.f32 %v3453_v59, %v3445_v40 }
 0x2fb   : > { %v3091_v48 = vpop.f32.mrf.mxu0  ;;  %v3138_v49 = vpop.f32.mrf.mxu1 }
 0x2fc   : > { %v3462_v25 = vadd.f32 %v3454_v12, %v3036_v58  ;;  %v3446_v53 = vmax.f32 %v3138_v49, 0.0 }
 0x2fd   : > { %v6144_v54 = vpop.f32.mrf.mxu0  ;;  %v6149_v47 = vpop.f32.mrf.mxu1 }
 0x2fe   : > { %v3455_v34 = vmul.f32 %v3453_v59, %v3446_v53 }
 0x2ff   : > { %v3188_v55 = vpop.f32.mrf.mxu0  ;;  %v3141_v56 = vpop.f32.mrf.mxu1 }
 0x300   : > { %v3447_v57 = vmax.f32 %v3188_v55, 0.0  ;;  %v3463_v46 = vadd.f32 %v3455_v34, %v3037_v43 }
 0x301   : > { %v6155_v19 = vpop.f32.mrf.mxu0  ;;  %v6150_v52 = vpop.f32.mrf.mxu1 }
 0x302   : > { %v3456_v51 = vmul.f32 %v3453_v59, %v3447_v57 }
 0x303   : > { %v3191_v61 = vpop.f32.mrf.mxu0  ;;  %v3238_v5 = vpop.f32.mrf.mxu1 }
 0x304   : > { %v3464_v62 = vadd.f32 %v3456_v51, %v3038_v4  ;;  %v3448_v63 = vmax.f32 %v3238_v5, 0.0 }
 0x305   : > { %v6156_v35 = vpop.f32.mrf.mxu0  ;;  %v6161_v3 = vpop.f32.mrf.mxu1 }
 0x306   : > { %v3457_v7 = vmul.f32 %v3453_v59, %v3448_v63 }
 0x307   : > { %v3288_v58 = vpop.f32.mrf.mxu0  ;;  %v3241_v8 = vpop.f32.mrf.mxu1 }
 0x308   : > { %v3449_v10 = vmax.f32 %v3288_v58, 0.0  ;;  %v3465_v1 = vadd.f32 %v3457_v7, %v3039_v17 }
 0x309   : > { %v6167_v11 = vpop.f32.mrf.mxu0  ;;  %v6162_v15 = vpop.f32.mrf.mxu1 }
 0x30a   : > { %v3458_v13 = vmul.f32 %v3453_v59, %v3449_v10 }
 0x30b   : > { %v3291_v16 = vpop.f32.mrf.mxu0  ;;  %v3338_v43 = vpop.f32.mrf.mxu1 }
 0x30c   : > { %v3466_v60 = vadd.f32 %v3458_v13, %v3040_v2  ;;  %v3450_v18 = vmax.f32 %v3338_v43, 0.0 }
 0x30d   : > { %v6168_v21 = vpop.f32.mrf.mxu0  ;;  %v6173_v22 = vpop.f32.mrf.mxu1 }
 0x30e   : > { %v3459_v23 = vmul.f32 %v3453_v59, %v3450_v18 }
 0x30f   : > { %v3388_v4 = vpop.f32.mrf.mxu0  ;;  %v3341_v24 = vpop.f32.mrf.mxu1 }
 0x310   : > { %v3451_v26 = vmax.f32 %v3388_v4, 0.0  ;;  %v3467_v50 = vadd.f32 %v3459_v23, %v3041_v31 }
 0x311   : > { %v6179_v20 = vpop.f32.mrf.mxu0  ;;  %v6174_v27 = vpop.f32.mrf.mxu1 }
 0x312   : > { %v3460_v14 = vmul.f32 %v3453_v59, %v3451_v26 }
 0x313   : > { %v3391_v28 = vpop.f32.mrf.mxu0  ;;  %v3438_v29 = vpop.f32.mrf.mxu1 }
 0x314   : > { %v3468_v17 = vadd.f32 %v3460_v14, %v3042_v33  ;;  %v3452_v32 = vmax.f32 %v3438_v29, 0.0 }
 0x315   : > { %v6180_v30 = vpop.f32.mrf.mxu0  ;;  %v6185_v9 = vpop.f32.mrf.mxu1 }
 0x316   : > { %v3461_v2 = vmul.f32 %v3453_v59, %v3452_v32 }
 0x317   : > { %v3514_v37 = vpop.f32.mrf.mxu0  ;;  %v3441_v36 = vpop.f32.mrf.mxu1 }
 0x318   : > { %v3871_v6 = vmax.f32 %v3514_v37, 0.0  ;;  %v3469_v38 = vadd.f32 %v3461_v2, %v3043_v41 }
 0x319   : > { %v6191_v39 = vpop.f32.mrf.mxu0  ;;  %v6186_v40 = vpop.f32.mrf.mxu1 }
 0x31a   : > { %v3880_v0 = vmul.f32 %v3879_v44, %v3871_v6 }
 0x31b   : > { %v3517_v42 = vpop.f32.mrf.mxu0  ;;  %v3564_v12 = vpop.f32.mrf.mxu1 }
 0x31c   : > { %v7501_v31 = vadd.f32 %v3880_v0, %v3462_v25  ;;  %v3872_v45 = vmax.f32 %v3564_v12, 0.0 }
 0x31d   : > { %v6192_v48 = vpop.f32.mrf.mxu0  ;;  %v6197_v33 = vpop.f32.mrf.mxu1 }
 0x31e   : > { %v3881_v49 = vmul.f32 %v3879_v44, %v3872_v45 }
 0x31f   : > { %v3614_v53 = vpop.f32.mrf.mxu0  ;;  %v3567_v54 = vpop.f32.mrf.mxu1 }
 0x320   : > { %v3873_v47 = vmax.f32 %v3614_v53, 0.0  ;;  %v7503_v59 = vadd.f32 %v3881_v49, %v3463_v46 }
 0x321   : > { %v6203_v34 = vpop.f32.mrf.mxu0  ;;  %v6198_v56 = vpop.f32.mrf.mxu1 }
 0x322   : > { %v3882_v55 = vmul.f32 %v3879_v44, %v3873_v47 }
 0x323   : > { %v3617_v41 = vpop.f32.mrf.mxu0  ;;  %v3664_v19 = vpop.f32.mrf.mxu1 }
 0x324   : > { %v7505_v57 = vadd.f32 %v3882_v55, %v3464_v62  ;;  %v3874_v51 = vmax.f32 %v3664_v19, 0.0 }
 0x325   : > { %v6204_v25 = vpop.f32.mrf.mxu0  ;;  %v6209_v52 = vpop.f32.mrf.mxu1 }
 0x326   : > { %v3883_v61 = vmul.f32 %v3879_v44, %v3874_v51 }
 0x327   : > { %v3714_v5 = vpop.f32.mrf.mxu0  ;;  %v3667_v63 = vpop.f32.mrf.mxu1 }
 0x328   : > { %v3875_v35 = vmax.f32 %v3714_v5, 0.0  ;;  %v7507_v3 = vadd.f32 %v3883_v61, %v3465_v1 }
 0x329   : > { %v6215_v7 = vpop.f32.mrf.mxu0  ;;  %v6210_v46 = vpop.f32.mrf.mxu1 }
 0x32a   : > { %v3884_v58 = vmul.f32 %v3879_v44, %v3875_v35 }
 0x32b   : > { %v3717_v8 = vpop.f32.mrf.mxu0  ;;  %v3764_v11 = vpop.f32.mrf.mxu1 }
 0x32c   : > { %v7509_v10 = vadd.f32 %v3884_v58, %v3466_v60  ;;  %v3876_v13 = vmax.f32 %v3764_v11, 0.0 }
 0x32d   : > { %v6216_v62 = vpop.f32.mrf.mxu0  ;;  %v6221_v15 = vpop.f32.mrf.mxu1 }
 0x32e   : > { %v3885_v16 = vmul.f32 %v3879_v44, %v3876_v13 }
 0x32f   : > { %v3814_v43 = vpop.f32.mrf.mxu0  ;;  %v3767_v18 = vpop.f32.mrf.mxu1 }
 0x330   : > { %v3877_v21 = vmax.f32 %v3814_v43, 0.0  ;;  %v7511_v22 = vadd.f32 %v3885_v16, %v3467_v50 }
 0x331   : > { %v6227_v23 = vpop.f32.mrf.mxu0  ;;  %v6222_v1 = vpop.f32.mrf.mxu1 }
 0x332   : > { %v3886_v4 = vmul.f32 %v3879_v44, %v3877_v21 }
 0x333   : > { %v3817_v24 = vpop.f32.mrf.mxu0  ;;  %v3864_v20 = vpop.f32.mrf.mxu1 }
 0x334   : > { %v7513_v26 = vadd.f32 %v3886_v4, %v3468_v17  ;;  %v3878_v14 = vmax.f32 %v3864_v20, 0.0 }
 0x335   : > { %v6228_v60 = vpop.f32.mrf.mxu0  ;;  %v6233_v27 = vpop.f32.mrf.mxu1 }
 0x336   : > { %v3887_v28 = vmul.f32 %v3879_v44, %v3878_v14 }
 0x337   : > { %v7515_v29 = vpop.f32.mrf.mxu0  ;;  %v3867_v32 = vpop.f32.mrf.mxu1 }
 0x338   : > { %v7517_v30 = vadd.f32 %v3887_v28, %v3469_v38 }
 0x339   : > { %v6239_v9 = vpop.f32.mrf.mxu0  ;;  %v6234_v2 = vpop.f32.mrf.mxu1 }
 0x33a   : > { %v4297_v9 = vmax.f32 %v7515_v29, 0.0 }
 0x33b   : > { %v3943_v50 = vpop.f32.mrf.mxu0  ;;  %v7519_v37 = vpop.f32.mrf.mxu1 }
 0x33c   : > { %v7550_v50 = vstv %s5634_s15  ;;  %s5330_s15 = sshll.u32 %s333_s14, 4  ;;  %s5331_s15 = int_to_ptr.vmem [resolvable:$true] %s5330_s15 }
 0x33d   : > { %v6240_v36 = vpop.f32.mrf.mxu0  ;;  %v6245_v6 = vpop.f32.mrf.mxu1  ;;  %s6508_s21 = scalar_lea.vmem %s5331_s15, 16 }
 0x33e   : > { %p6509_p10 = scmp.ne.s32.totalorder %s5331_s15, %s6508_s21 }
 0x33f   : > { %v7521_v39 = vpop.f32.mrf.mxu0  ;;  %v3993_v17 = vpop.f32.mrf.mxu1 }
 0x340   : > { %p6510_p12 = pnand %p6509_p10, %p6667_p5 }
 0x341   : > { %v6251_v0 = vpop.f32.mrf.mxu0  ;;  %v6246_v40 = vpop.f32.mrf.mxu1 }
 0x342   : > { %v7552_v0 = vstv %s5643_s16  ;;  %p6511_p13 = pneg %p6510_p12 }
 0x343   : > { %v4043_v42 = vpop.f32.mrf.mxu0  ;;  %v7523_v12 = vpop.f32.mrf.mxu1 }
 0x344   : > { %v7555_v42 = vld [vmem:[%s7548_s22] sm:$0xff]  }
 0x345   : > { %v6252_v44 = vpop.f32.mrf.mxu0  ;;  %v6257_v45 = vpop.f32.mrf.mxu1 }
 0x346   : > { %v4306_v44 = vmul.f32 %v7550_v50, %v4297_v9  ;;  %v4298_v45 = vmax.f32 %v7519_v37, 0.0 }
 0x347   : > { %v7525_v48 = vpop.f32.mrf.mxu0  ;;  %v4093_v38 = vpop.f32.mrf.mxu1 }
 0x349   : > { %v6263_v33 = vpop.f32.mrf.mxu0  ;;  %v6258_v49 = vpop.f32.mrf.mxu1 }
 0x34b   : > { %v4143_v53 = vpop.f32.mrf.mxu0  ;;  %v7527_v54 = vpop.f32.mrf.mxu1 }
 0x34c   : > { %v5677_v53 = vunpack.c.0.s8 %v7555_v42 }
 0x34d   : > { %v6264_v47 = vpop.f32.mrf.mxu0  ;;  %v6269_v34 = vpop.f32.mrf.mxu1 }
 0x34f   : > { %v7529_v55 = vpop.f32.mrf.mxu0  ;;  %v4193_v56 = vpop.f32.mrf.mxu1 }
 0x350   : > { %v7563_v56 = vstv %s5652_s18  ;;  %s5328_s18 = scalar_lea.hbm %s7671_s7, %s5654_s10 }
 0x351   : > { %v6275_v41 = vpop.f32.mrf.mxu0  ;;  %v6270_v19 = vpop.f32.mrf.mxu1 }
 0x352   : > { %v4314_v41 = vadd.f32 %v4306_v44, %v7501_v31  ;;  %v4299_v19 = vmax.f32 %v7521_v39, 0.0 }
 0x353   : > { %v4243_v51 = vpop.f32.mrf.mxu0  ;;  %v7531_v25 = vpop.f32.mrf.mxu1 }
 0x354   : > { %v4308_v31 = vmul.f32 %v7550_v50, %v4299_v19 }
 0x355   : > { %v6276_v52 = vpop.f32.mrf.mxu0  ;;  %v6281_v61 = vpop.f32.mrf.mxu1 }
 0x356   : > { %v4307_v61 = vmul.f32 %v7550_v50, %v4298_v45 }
 0x357   : > { %v4366_v5 = vpop.f32.mrf.mxu0  ;;  %v4293_v63 = vpop.f32.mrf.mxu1 }
 0x358   : > { %v4723_v6 = vmax.f32 %v4366_v5, 0.0 }
 0x359   : > { %v6287_v35 = vpop.f32.mrf.mxu0  ;;  %v6282_v7 = vpop.f32.mrf.mxu1 }
 0x35a   : > { %v4732_v33 = vmul.f32 %v7552_v0, %v4723_v6 }
 0x35b   : > { %v4369_v58 = vpop.f32.mrf.mxu0  ;;  %v4416_v46 = vpop.f32.mrf.mxu1 }
 0x35c   : > { %v4724_v47 = vmax.f32 %v4416_v46, 0.0  ;;  %v4740_v37 = vadd.f32 %v4732_v33, %v4314_v41  ;;  %v5190_v58 = vcvt.s32.f32 %v5677_v53 }
 0x35d   : > { %v6288_v8 = vpop.f32.mrf.mxu0  ;;  %v6293_v11 = vpop.f32.mrf.mxu1 }
 0x35e   : > { %v4733_v46 = vmul.f32 %v7552_v0, %v4724_v47  ;;  %v5678_v11 = vunpack.c.1.s8 %v7555_v42  ;;  %v5682_v47 = vunpack.c.3.s8 %v7555_v42 }
 0x35f   : > { %v7533_v13 = vpop.f32.mrf.mxu0  ;;  %v4419_v62 = vpop.f32.mrf.mxu1 }
 0x360   : > { %v4725_v63 = vmax.f32 %v7533_v13, 0.0  ;;  %v5191_v9 = vcvt.s32.f32 %v5678_v11 }
 0x361   : > { %v6299_v15 = vpop.f32.mrf.mxu0  ;;  %v6294_v16 = vpop.f32.mrf.mxu1 }
 0x362   : > { %v4315_v15 = vadd.f32 %v4307_v61, %v7503_v59  ;;  %v4300_v16 = vmax.f32 %v7523_v12, 0.0  ;;  %v4734_v13 = vmul.f32 %v7552_v0, %v4725_v63  ;;  %v4316_v59 = vadd.f32 %v4308_v31, %v7505_v57 }
 0x363   : > { %v4469_v43 = vpop.f32.mrf.mxu0  ;;  %v7535_v18 = vpop.f32.mrf.mxu1  ;;  %v4301_v12 = vmax.f32 %v7525_v48, 0.0  ;;  %v4303_v31 = vmax.f32 %v7529_v55, 0.0 }
 0x364   : > { %v4742_v45 = vadd.f32 %v4734_v13, %v4316_v59 }
 0x365   : > { %v6300_v21 = vpop.f32.mrf.mxu0  ;;  %v6305_v23 = vpop.f32.mrf.mxu1  ;;  %v4310_v41 = vmul.f32 %v7550_v50, %v4301_v12  ;;  %v4304_v12 = vmax.f32 %v7531_v25, 0.0 }
 0x367   : > { %v7537_v4 = vpop.f32.mrf.mxu0  ;;  %v4519_v1 = vpop.f32.mrf.mxu1 }
 0x369   : > { %v6311_v24 = vpop.f32.mrf.mxu0  ;;  %v6306_v20 = vpop.f32.mrf.mxu1 }
 0x36a   : > { %v5681_v24 = vunpack.c.2.s8 %v7555_v42  ;;  %v4741_v20 = vadd.f32 %v4733_v46, %v4315_v15 }
 0x36b   : > { %v4569_v14 = vpop.f32.mrf.mxu0  ;;  %v7539_v60 = vpop.f32.mrf.mxu1 }
 0x36c   : > { %v4726_v14 = vmax.f32 %v7535_v18, 0.0  ;;  %v4727_v18 = vmax.f32 %v7537_v4, 0.0  ;;  %v4302_v4 = vmax.f32 %v7527_v54, 0.0  ;;  %v4728_v46 = vmax.f32 %v7539_v60, 0.0 }
 0x36d   : > { %v6312_v27 = vpop.f32.mrf.mxu0  ;;  %v6317_v28 = vpop.f32.mrf.mxu1  ;;  %v4318_v54 = vadd.f32 %v4310_v41, %v7509_v10 }
 0x36e   : > { %v4735_v57 = vmul.f32 %v7552_v0, %v4726_v14  ;;  %v4736_v63 = vmul.f32 %v7552_v0, %v4727_v18  ;;  %v4737_v10 = vmul.f32 %v7552_v0, %v4728_v46 }
 0x36f   : > { %v7542_v32 = vpop.f32.mrf.mxu0  ;;  %v4619_v2 = vpop.f32.mrf.mxu1 }
 0x370   : > { %v4744_v13 = vadd.f32 %v4736_v63, %v4318_v54  ;;  %v4729_v60 = vmax.f32 %v7542_v32, 0.0 }
 0x371   : > { %v6323_v36 = vpop.f32.mrf.mxu0  ;;  %v6318_v17 = vpop.f32.mrf.mxu1 }
 0x372   : > { %v4309_v17 = vmul.f32 %v7550_v50, %v4300_v16  ;;  %v4311_v16 = vmul.f32 %v7550_v50, %v4302_v4 }
 0x373   : > { %v4669_v40 = vpop.f32.mrf.mxu0  ;;  %v7558_v29 = vpop.f32.mrf.mxu1 }
 0x374   : > { %v4319_v59 = vadd.f32 %v4311_v16, %v7511_v22  ;;  %v4730_v18 = vmax.f32 %v7558_v29, 0.0  ;;  %v5239_v16 = vlaneseq }
 0x375   : > { %v6324_v38 = vpop.f32.mrf.mxu0  ;;  %v6329_v49 = vpop.f32.mrf.mxu1 }
 0x376   : > { %v5192_v49 = vcvt.s32.f32 %v5681_v24  ;;  %v4739_v4 = vmul.f32 %v7552_v0, %v4730_v18 }
 0x377   : > { %v4792_v34 = vpop.f32.mrf.mxu0  ;;  %v4719_v51 = vpop.f32.mrf.mxu1 }
 0x378   : > { %v5149_v52 = vmax.f32 %v4792_v34, 0.0  ;;  %v7588_v34 = vld [vmem:[%s7548_s22 + $0x8] sm:$0xff]   ;;  %s6585_s22 = smov [#allocation8]  }
 0x379   : > { %v6335_v5 = vpop.f32.mrf.mxu0  ;;  %v6330_v7 = vpop.f32.mrf.mxu1  ;;  %v5685_v42 = vunpack.c.0.s8 %v7588_v34  ;;  %v5686_v14 = vunpack.c.1.s8 %v7588_v34  ;;  %s6512_s20 = sshll.u32 %s6585_s22, 4  ;;  %s6513_s20 = int_to_ptr.vmem [resolvable:$false] %s6512_s20 }
 0x37a   : > { %v5158_v35 = vmul.f32 %v7563_v56, %v5149_v52  ;;  %v4317_v52 = vadd.f32 %v4309_v17, %v7507_v3  ;;  %v5193_v3 = vcvt.s32.f32 %v5682_v47  ;;  %s6514_s6 = scalar_lea.vmem %s6513_s20, 32  ;;  %p6515_p0 = scmp.lt.s32.totalorder %s5331_s15, %s6513_s20 }
 0x37b   : > { %v4795_v8 = vpop.f32.mrf.mxu0  ;;  %v4842_v62 = vpop.f32.mrf.mxu1  ;;  %v5194_v24 = vcvt.s32.f32 %v5685_v42  ;;  %v5195_v22 = vcvt.s32.f32 %v5686_v14  ;;  %p6516_p1 = scmp.lt.s32.totalorder %s6514_s6, %s6508_s21 }
 0x37c   : > { %v5166_v39 = vadd.f32 %v5158_v35, %v4740_v37  ;;  %v5150_v43 = vmax.f32 %v4842_v62, 0.0 }
 0x37d   : > { %v6336_v21 = vpop.f32.mrf.mxu0  ;;  %v6341_v23 = vpop.f32.mrf.mxu1  ;;  %p6517_p2 = por %p6516_p1, %p6515_p0 }
 0x37e   : > { %v5198_v1 = vmul.f32 %v5190_v58, %v5166_v39  ;;  %v5159_v27 = vmul.f32 %v7563_v56, %v5150_v43  ;;  %v4743_v58 = vadd.f32 %v4735_v57, %v4317_v52 }
 0x37f   : > { %v4892_v28 = vpop.f32.mrf.mxu0  ;;  %v4845_v2 = vpop.f32.mrf.mxu1  ;;  %p6518_p3 = pnand %p6517_p2, %p6511_p13 }
 0x380   : > { %v5151_v36 = vmax.f32 %v4892_v28, 0.0  ;;  %v5207_v6 = vsel %vm5206_vm5, %v5198_v1, 0.0  ;;  %v5167_v40 = vadd.f32 %v5159_v27, %v4741_v20  ;;  %v4312_v27 = vmul.f32 %v7550_v50, %v4303_v31 }
 0x381   : > { %5208 = vadd.xlane.f32.xlu0 %v5207_v6  ;;  %v6347_v44 = vpop.f32.mrf.mxu0  ;;  %v6342_v33 = vpop.f32.mrf.mxu1  ;;  %v4738_v6 = vmul.f32 %v7552_v0, %v4729_v60 }
 0x382   : > { %v5160_v38 = vmul.f32 %v7563_v56, %v5151_v36  ;;  %v5199_v53 = vmul.f32 %v5191_v9, %v5167_v40  ;;  %v5689_v44 = vunpack.c.2.s8 %v7588_v34  ;;  %v4320_v25 = vadd.f32 %v4312_v27, %v7513_v26 }
 0x383   : > { %v4895_v48 = vpop.f32.mrf.mxu0  ;;  %v4942_v51 = vpop.f32.mrf.mxu1  ;;  %v5690_v26 = vunpack.c.3.s8 %v7588_v34 }
 0x384   : > { %v5168_v19 = vadd.f32 %v5160_v38, %v4742_v45  ;;  %v5152_v61 = vmax.f32 %v4942_v51, 0.0  ;;  %v5210_v5 = vsel %vm5206_vm5, %v5199_v53, 0.0  ;;  %v4745_v45 = vadd.f32 %v4737_v10, %v4319_v59 }
 0x385   : > { %v6348_v37 = vpop.f32.mrf.mxu0  ;;  %5211 = vadd.xlane.f32.xlu1 %v5210_v5  ;;  %v6353_v35 = vpop.f32.mrf.mxu1  ;;  %v4313_v53 = vmul.f32 %v7550_v50, %v4304_v12  ;;  %v5196_v29 = vcvt.s32.f32 %v5689_v44 }
 0x386   : > { %v5200_v7 = vmul.f32 %v5192_v49, %v5168_v19  ;;  %v5161_v8 = vmul.f32 %v7563_v56, %v5152_v61  ;;  %v4746_v19 = vadd.f32 %v4738_v6, %v4320_v25 }
 0x387   : > { %v4992_v11 = vpop.f32.mrf.mxu0  ;;  %v4945_v39 = vpop.f32.mrf.mxu1  ;;  %v4321_v35 = vadd.f32 %v4313_v53, %v7517_v30 }
 0x388   : > { %v5153_v62 = vmax.f32 %v4992_v11, 0.0  ;;  %v5213_v15 = vsel %vm5206_vm5, %v5200_v7, 0.0  ;;  %v5169_v43 = vadd.f32 %v5161_v8, %v4743_v58  ;;  %v5197_v11 = vcvt.s32.f32 %v5690_v26 }
 0x389   : > { %5214 = vadd.xlane.f32.xlu0 %v5213_v15  ;;  %v6359_v21 = vpop.f32.mrf.mxu0  ;;  %v6354_v1 = vpop.f32.mrf.mxu1  ;;  %v4747_v8 = vadd.f32 %v4739_v4, %v4321_v35 }
 0x38a   : > { %v5162_v23 = vmul.f32 %v7563_v56, %v5153_v62  ;;  %v5201_v55 = vmul.f32 %v5193_v3, %v5169_v43  ;;  %v5653_v62 = vld [vmem:[%s356_s25] ss:$0 sm:$0xff]  ;;  %v5240_v21 = vand.u32 127, %v5239_v16 }
 0x38b   : > { %v4995_v20 = vpop.f32.mrf.mxu0  ;;  %v5042_v9 = vpop.f32.mrf.mxu1 }
 0x38c   : > { %v5170_v28 = vadd.f32 %v5162_v23, %v4744_v13  ;;  %v5154_v2 = vmax.f32 %v5042_v9, 0.0  ;;  %v5216_v32 = vsel %vm5206_vm5, %v5201_v55, 0.0  ;;  %v5242_v13 = vshrl.u32 %v5239_v16, 7 }
 0x38d   : > { %v6360_v36 = vpop.f32.mrf.mxu0  ;;  %5217 = vadd.xlane.f32.xlu0 %v5216_v32  ;;  %v6365_v17 = vpop.f32.mrf.mxu1 }
 0x38e   : > { %v5202_v40 = vmul.f32 %v5194_v24, %v5170_v28  ;;  %v5163_v38 = vmul.f32 %v7563_v56, %v5154_v2  ;;  %v5243_v23 = vsub.s32 %v5240_v21, %v5242_v13 }
 0x38f   : > { %v5092_v33 = vpop.f32.mrf.mxu0  ;;  %v5045_v49 = vpop.f32.mrf.mxu1 }
 0x390   : > { %v5155_v57 = vmax.f32 %v5092_v33, 0.0  ;;  %v5219_v48 = vsel %vm5206_vm5, %v5202_v40, 0.0  ;;  %v5171_v47 = vadd.f32 %v5163_v38, %v4745_v45  ;;  %v6584_v38 = vmov 0  }
 0x391   : > { %v6371_v41 = vpop.f32.mrf.mxu0  ;;  %5220 = vadd.xlane.f32.xlu0 %v5219_v48  ;;  %v6366_v52 = vpop.f32.mrf.mxu1 }
 0x392   : > { %v5164_v51 = vmul.f32 %v7563_v56, %v5155_v57  ;;  %v5203_v5 = vmul.f32 %v5195_v22, %v5171_v47  ;;  %6442 = vset.pattern.permute.xlu0 %v6584_v38  ;;  %v5304_v22 = vstv %s5303_s30 }
 0x393   : > { %v5095_v61 = vpop.f32.mrf.mxu0  ;;  %v5142_v63 = vpop.f32.mrf.mxu1 }
 0x394   : > { %v5172_v37 = vadd.f32 %v5164_v51, %v4746_v19  ;;  %v5156_v7 = vmax.f32 %v5142_v63, 0.0  ;;  %v5222_v50 = vsel %vm5206_vm5, %v5203_v5, 0.0 }
 0x395   : > { %v6372_v42 = vpop.f32.mrf.mxu0  ;;  %5223 = vadd.xlane.f32.xlu1 %v5222_v50  ;;  %v6377_v58 = vpop.f32.mrf.mxu1 }
 0x396   : > { %v5204_v46 = vmul.f32 %v5196_v29, %v5172_v37  ;;  %v5165_v0 = vmul.f32 %v7563_v56, %v5156_v7 }
 0x397   : > { %v5145_v3 = vpop.f32.mrf.mxu1 }
 0x398   : > { %v5225_v34 = vsel %vm5206_vm5, %v5204_v46, 0.0  ;;  %v5173_v54 = vadd.f32 %v5165_v0, %v4747_v8 }
 0x399   : > { %5226 = vadd.xlane.f32.xlu0 %v5225_v34  ;;  %v6378_v31 = vpop.f32.mrf.mxu1 }
 0x39a   : > { %v5205_v30 = vmul.f32 %v5197_v11, %v5173_v54 }
 0x39c   : > { %v5228_v39 = vsel %vm5206_vm5, %v5205_v30, 0.0 }
 0x39d   : > { %5229 = vadd.xlane.f32.xlu1 %v5228_v39 }
 0x3ae   : > { %5299 = vbcast.lane.b32.xlu1 %v5653_v62, 256 }
 0x40a   : > { %v5209_v56 = vpop.xlane.xlu0 %5208 }
 0x40b   : > { %v5244_v55 = vrot.slane %v5209_v56, %v5243_v23 }
 0x40e   : > { %v5212_v60 = vpop.xlane.xlu1 %5211 }
 0x40f   : > { %v5248_v24 = vrot.slane %v5212_v60, %v5243_v23 }
 0x411   : > { %v5274_v9 = vsel %vm5273_vm6, %v5248_v24, %v5244_v55 }
 0x412   : > { %v5215_v15 = vpop.xlane.xlu0 %5214 }
 0x413   : > { %v5252_v10 = vrot.slane %v5215_v15, %v5243_v23 }
 0x415   : > { %v5276_v12 = vsel %vm5275_vm7, %v5252_v10, %v5274_v9 }
 0x416   : > { %v5218_v43 = vpop.xlane.xlu0 %5217 }
 0x417   : > { %v5256_v14 = vrot.slane %v5218_v43, %v5243_v23 }
 0x419   : > { %v5278_v32 = vsel %vm5277_vm8, %v5256_v14, %v5276_v12 }
 0x41a   : > { %v5221_v1 = vpop.xlane.xlu0 %5220 }
 0x41b   : > { %v5260_v28 = vrot.slane %v5221_v1, %v5243_v23 }
 0x41d   : > { %v5280_v36 = vsel %vm5279_vm9, %v5260_v28, %v5278_v32 }
 0x41e   : > { %v5224_v20 = vpop.xlane.xlu1 %5223 }
 0x41f   : > { %v5264_v59 = vrot.slane %v5224_v20, %v5243_v23 }
 0x421   : > { %v5282_v17 = vsel %vm5281_vm10, %v5264_v59, %v5280_v36 }
 0x422   : > { %v5227_v27 = vpop.xlane.xlu0 %5226 }
 0x423   : > { %v5268_v2 = vrot.slane %v5227_v27, %v5243_v23 }
 0x425   : > { %v5284_v44 = vsel %vm5283_vm11, %v5268_v2, %v5282_v17 }
 0x426   : > { %v5230_v6 = vpop.xlane.xlu1 %5229 }
 0x427   : > { %v5272_v40 = vrot.slane %v5230_v6, %v5243_v23 }
 0x429   : > { %v5286_v45 = vsel %vm5285_vm12, %v5272_v40, %v5284_v44 }
 0x42a   : > { %v5289_v18 = vsel %vm5288_vm13, %v5286_v45, 0.0  ;;  %v5300_v33 = vpop.permute.xlu1 %5299 }
 0x42b   : > { %5290 = vadd.xlane.f32.xlu0 %v5289_v18 }
 0x4b4   : > { %v5291_v25 = vpop.xlane.xlu0 %5290 }
 0x4b5   : > { %v5302_v49 = vmul.f32 %v5300_v33, %v5291_v25 }
 0x4b7   : > { %v5305_v57 = vadd.f32 %v5304_v22, %v5302_v49 }
 0x4b9   : > { %5308 = vperm.xlu0 %6442, %v5305_v57  }
 0x534   : > { %v5309_v48 = vpop.permute.xlu0 %5308 }
 0x535   : > { %v5313_v53 = vrot.slane %v5309_v48, %v5243_v23 }
 0x537   : > { %5316 = vst.msk [vmem:[%s333_s14] sm:$0x1] %vm5315_vm14, %v5313_v53 }
 0x538   : > { %6521 = shalt.err (!%p6518_p3)
}
 0x539   : > { %s6522_s23 = scalar_lea.hbm %s5328_s18, 16  ;;  %s6526_s30 = scalar_lea.hbm %s7671_s7, 32 }
 0x53a   : > { %p6523_p4 = scmp.ne.s32.totalorder %s5328_s18, %s6522_s23  ;;  %p6527_p11 = scmp.lt.s32.totalorder %s5328_s18, %s7671_s7 }
 0x53b   : > { %p6528_p9 = scmp.lt.s32.totalorder %s6526_s30, %s6522_s23 }
 0x53c   : > { %p6524_p7 = pnand %p6523_p4, %p6667_p5 }
 0x53d   : > { %p6529_p10 = por %p6528_p9, %p6527_p11 }
 0x53e   : > { %p6525_p8 = pneg %p6524_p7 }
 0x540   : > { %p6530_p12 = pnand %p6529_p10, %p6525_p8 }
 0x542   : > { %6533 = shalt.err (!%p6530_p12)
}
 0x543   : > { %6386 = dma.vmem_to_hbm [thread:$0]  (%p6667_p5), %s5331_s15, 16, %s5328_s18, %s5318_s19  }
 0x544 PF: > { %p6398_p13 = scmp.ge.s32.totalorder %s6572_s29, 2  ;;  %s5342_s14 = sand.u32 1, %s6560_s26  }
 0x545   : > { %s5343_s16 = scalar_lea.sflag [#allocation6], %s5342_s14 }
 0x546   : > { %p6393_p0 = pnand %p6398_p13, %p6671_p6 }
 0x548   : > { %p6394_p1 = pneg %p6393_p0 }
 0x54a   : > { %6555 = dma.done.wait (%p6394_p1), %s5343_s16, 16  }
 0x54b   : > { %6557 = vsyncadd (%p6394_p1), %s5343_s16, 4294967280  ;;  %p19_p2 = scmp.ge.s32.totalorder %s6654_s8, 4   ;;  %s7675_s26 = smov %s6564_s27 }
 0x54c   : > { %s7676_s27 = smov %s6568_s28  ;;  %s7677_s28 = smov %s6665_s11 }
 0x54d   : > { %s7678_s29 = smov %s6654_s8  ;;  %21 = sbr.rel (!%p19_p2) target bundleno = 6 (0x6), region = 125 }
 0x552   :  { %5347 = vsyncpa [#allocation6], 1 }
 0x553   :  { %5349 = vsyncpa [#allocation6 + $0x1], 1 }
 0x554   :  { %5350 = vsyncpa [#allocation7], 1 }
 0x555   :  { %5352 = vsyncpa [#allocation7 + $0x1], 1 }

</bundles_post_ra>
